<compile_context>
chip_gen: v7x
topology: tpu7x:2x2x1
jax: 0.10.0
libtpu: 0.0.40
codegen_flags: <defaults>
</compile_context>

<pallas_src>
import math

import jax
import jax.numpy as jnp
from jax import lax
from jax.experimental import pallas as pl
from jax.experimental.pallas import tpu as pltpu


def _make_kernel(has_prev):
    """Kernel for one (batch, head) grid step."""

    def kernel(*refs):
        if has_prev:
            (x_ref, prev_ref, wk_ref, wq_ref, wv_ref,
             bk_ref, bq_ref, bv_ref, wout_ref, bout_ref,
             out_ref, energy_ref) = refs
        else:
            (x_ref, wk_ref, wq_ref, wv_ref,
             bk_ref, bq_ref, bv_ref, wout_ref, bout_ref,
             out_ref, energy_ref) = refs
            prev_ref = None

        h = pl.program_id(1)

        x = x_ref[0]                                               # (S, D)

        # Per-head projections on the MXU. scale is pre-folded into wq / bq.
        k = jnp.dot(x, wk_ref[0], preferred_element_type=jnp.float32) + bk_ref[0]
        q = jnp.dot(x, wq_ref[0], preferred_element_type=jnp.float32) + bq_ref[0]
        v = jnp.dot(x, wv_ref[0], preferred_element_type=jnp.float32) + bv_ref[0]

        # energy = q @ k^T (+ prev): contract last dims -> no explicit k.T.
        e = lax.dot_general(q, k, (((1,), (1,)), ((), ())),
                            preferred_element_type=jnp.float32)    # (S, S)
        if has_prev:
            e = e + prev_ref[0, 0]
        energy_ref[0, 0] = e

        # Row softmax; reciprocal goes to the (otherwise idle) EUP slot.
        p = jnp.exp(e - jnp.max(e, axis=-1, keepdims=True))
        attn = p * pl.reciprocal(jnp.sum(p, axis=-1, keepdims=True), approx=True)

        ctx = jnp.dot(attn, v, preferred_element_type=jnp.float32)  # (S, dh)

        # Output projection accumulated across heads into the resident block.
        @pl.when(h == 0)
        def _():
            out_ref[0] = jnp.broadcast_to(bout_ref[...], out_ref.shape[1:])

        out_ref[0] = out_ref[0] + jnp.dot(
            ctx, wout_ref[0], preferred_element_type=jnp.float32)

    return kernel


def residual_mha_pallas(x, params, num_heads, prev=None):
    """x: (B, S, D) float32.  Returns (out (B,S,D), energy (B,H,S,S))."""
    B, S, D = x.shape
    assert D % num_heads == 0, "`d_model` should be divisible by `num_heads`"
    dh = D // num_heads
    scale = 1.0 / math.sqrt(dh)
    has_prev = prev is not None

    wkqv_t = params["wkqv_t"]              # (D, 3D), columns = [K | Q | V]
    bkqv = params["bkqv"]                  # (3D,)
    wout_t = params["wout_t"]              # (D, D)
    bout = params["bout"].reshape(1, D)    # (1, D)

    # Wrapper-side layout prep (plain JAX, zero kernel cost): per-head slabs.
    def per_head(w_cols, b_cols, s=1.0):
        w = (w_cols * s).reshape(D, num_heads, dh).transpose(1, 0, 2)  # (H,D,dh)
        b = (b_cols * s).reshape(num_heads, 1, dh)                     # (H,1,dh)
        return w, b

    wk_h, bk_h = per_head(wkqv_t[:, 0 * D:1 * D], bkqv[0 * D:1 * D])
    wq_h, bq_h = per_head(wkqv_t[:, 1 * D:2 * D], bkqv[1 * D:2 * D], scale)
    wv_h, bv_h = per_head(wkqv_t[:, 2 * D:3 * D], bkqv[2 * D:3 * D])
    wout_h = wout_t.reshape(num_heads, dh, D)                          # (H,dh,D)

    in_arrays = [x]
    in_specs = [pl.BlockSpec((1, S, D), lambda b, h: (b, 0, 0))]
    if has_prev:
        in_arrays.append(prev)
        in_specs.append(pl.BlockSpec((1, 1, S, S), lambda b, h: (b, h, 0, 0)))
    in_arrays += [wk_h, wq_h, wv_h, bk_h, bq_h, bv_h, wout_h, bout]
    in_specs += [
        pl.BlockSpec((1, D, dh), lambda b, h: (h, 0, 0)),   # wk_h
        pl.BlockSpec((1, D, dh), lambda b, h: (h, 0, 0)),   # wq_h (scaled)
        pl.BlockSpec((1, D, dh), lambda b, h: (h, 0, 0)),   # wv_h
        pl.BlockSpec((1, 1, dh), lambda b, h: (h, 0, 0)),   # bk_h
        pl.BlockSpec((1, 1, dh), lambda b, h: (h, 0, 0)),   # bq_h (scaled)
        pl.BlockSpec((1, 1, dh), lambda b, h: (h, 0, 0)),   # bv_h
        pl.BlockSpec((1, dh, D), lambda b, h: (h, 0, 0)),   # wout_h
        pl.BlockSpec((1, D), lambda b, h: (0, 0)),          # bout
    ]
    out_specs = [
        pl.BlockSpec((1, S, D), lambda b, h: (b, 0, 0)),          # out (resident across h)
        pl.BlockSpec((1, 1, S, S), lambda b, h: (b, h, 0, 0)),    # energy
    ]

    grid_spec = pltpu.PrefetchScalarGridSpec(
        num_scalar_prefetch=0,
        grid=(B, num_heads),
        in_specs=in_specs,
        out_specs=out_specs,
    )

    out, energy = pl.pallas_call(
        _make_kernel(has_prev),
        grid_spec=grid_spec,
        out_shape=(
            jax.ShapeDtypeStruct((B, S, D), jnp.float32),
            jax.ShapeDtypeStruct((B, num_heads, S, S), jnp.float32),
        ),
        compiler_params=pltpu.CompilerParams(
            # head axis carries the output-projection reduction -> arbitrary.
            dimension_semantics=("parallel", "arbitrary"),
            vmem_limit_bytes=32 * 1024 * 1024,
        ),
    )(*in_arrays)
    return out, energy


def residual_mha_ref(x, params, num_heads, prev=None):
    """Pure-JAX reference mirroring the PyTorch forward exactly."""
    B, S, D = x.shape
    dh = D // num_heads
    scale = 1.0 / math.sqrt(dh)
    kqv = x @ params["wkqv_t"] + params["bkqv"]
    key, query, value = jnp.split(kqv, 3, axis=-1)
    key = key.reshape(B, S, num_heads, dh).transpose(0, 2, 3, 1)      # B,H,dh,S
    query = query.reshape(B, S, num_heads, dh).transpose(0, 2, 1, 3)  # B,H,S,dh
    value = value.reshape(B, S, num_heads, dh).transpose(0, 2, 1, 3)
    energy = scale * jnp.einsum("bhsd,bhdk->bhsk", query, key)
    if prev is not None:
        energy = energy + prev
    attn = jax.nn.softmax(energy, axis=-1)
    context = jnp.einsum("bhsk,bhkd->bhsd", attn, value)
    context = context.transpose(0, 2, 1, 3).reshape(B, S, D)
    out = context @ params["wout_t"] + params["bout"]
    return out, energy


def init_params(key, d_model):
    """Deterministic init (same shapes as the nn.Module); weights kept transposed."""
    k1, k2, k3, k4 = jax.random.split(key, 4)
    bound = 1.0 / math.sqrt(d_model)
    wkqv = jax.random.uniform(k1, (3 * d_model, d_model), jnp.float32, -bound, bound)
    bkqv = jax.random.uniform(k2, (3 * d_model,), jnp.float32, -bound, bound)
    wout = jax.random.uniform(k3, (d_model, d_model), jnp.float32, -bound, bound)
    bout = jax.random.uniform(k4, (d_model,), jnp.float32, -bound, bound)
    return {
        "wkqv_t": wkqv.T,   # (D, 3D)
        "bkqv": bkqv,
        "wout_t": wout.T,   # (D, D)
        "bout": bout,
    }


if __name__ == "__main__":
    # Small but lane-dense shapes: S and D multiples of 128, d_head = 32.
    B, S, D, H = 2, 128, 128, 4
    key = jax.random.PRNGKey(0)
    kx, kp, kprev = jax.random.split(key, 3)

    x = jax.random.normal(kx, (B, S, D), dtype=jnp.float32)
    prev = jax.random.normal(kprev, (B, H, S, S), dtype=jnp.float32)
    params = init_params(kp, D)

    # Residual-energy path.
    out, energy = residual_mha_pallas(x, params, H, prev=prev)
    out = jax.block_until_ready(out)
    energy = jax.block_until_ready(energy)

    out_ref, energy_ref = residual_mha_ref(x, params, H, prev=prev)
    assert jnp.allclose(energy, energy_ref, atol=1e-4, rtol=1e-4), "energy mismatch"
    # slightly looser: approx (EUP) reciprocal in the softmax denominator.
    assert jnp.allclose(out, out_ref, atol=2e-3, rtol=2e-3), "out mismatch"

    # prev=None path compiles a variant with no prev input (no zeros round-trip).
    out2, energy2 = residual_mha_pallas(x, params, H, prev=None)
    out2 = jax.block_until_ready(out2)
    out2_ref, energy2_ref = residual_mha_ref(x, params, H, prev=None)
    assert jnp.allclose(energy2, energy2_ref, atol=1e-4, rtol=1e-4), "energy mismatch (no prev)"
    assert jnp.allclose(out2, out2_ref, atol=2e-3, rtol=2e-3), "out mismatch (no prev)"

    print("KERNEL_OK")
</pallas_src>

<mosaic_0001>
module attributes {stable_mosaic.version = 11 : i64} {
  func.func @kernel(%arg0: i32, %arg1: i32, %arg2: memref<1x128x128xf32, #tpu.memory_space<vmem>>, %arg3: memref<1x1x128x128xf32, #tpu.memory_space<vmem>>, %arg4: memref<1x128x32xf32, #tpu.memory_space<vmem>>, %arg5: memref<1x128x32xf32, #tpu.memory_space<vmem>>, %arg6: memref<1x128x32xf32, #tpu.memory_space<vmem>>, %arg7: memref<1x1x32xf32, #tpu.memory_space<vmem>>, %arg8: memref<1x1x32xf32, #tpu.memory_space<vmem>>, %arg9: memref<1x1x32xf32, #tpu.memory_space<vmem>>, %arg10: memref<1x32x128xf32, #tpu.memory_space<vmem>>, %arg11: memref<1x128xf32, #tpu.memory_space<vmem>>, %arg12: memref<1x128x128xf32, #tpu.memory_space<vmem>>, %arg13: memref<1x1x128x128xf32, #tpu.memory_space<vmem>>) attributes {dimension_semantics = [#tpu.dimension_semantics<parallel>, #tpu.dimension_semantics<arbitrary>], iteration_bounds = array<i64: 2, 4>, scalar_prefetch = 0 : i64, scratch_operands = 0 : i64, tpu.core_type = #tpu.core_type<tc>, window_params = [{transform_indices = @transform_0, window_bounds = array<i64: 1, 128, 128>}, {transform_indices = @transform_1, window_bounds = array<i64: 1, 1, 128, 128>}, {transform_indices = @transform_2, window_bounds = array<i64: 1, 128, 32>}, {transform_indices = @transform_3, window_bounds = array<i64: 1, 128, 32>}, {transform_indices = @transform_4, window_bounds = array<i64: 1, 128, 32>}, {transform_indices = @transform_5, window_bounds = array<i64: 1, 1, 32>}, {transform_indices = @transform_6, window_bounds = array<i64: 1, 1, 32>}, {transform_indices = @transform_7, window_bounds = array<i64: 1, 1, 32>}, {transform_indices = @transform_8, window_bounds = array<i64: 1, 32, 128>}, {pipeline_mode = #tpu.pipeline_mode<synchronous>, transform_indices = @transform_9, window_bounds = array<i64: 1, 128>}, {transform_indices = @transform_10, window_bounds = array<i64: 1, 128, 128>}, {transform_indices = @transform_11, window_bounds = array<i64: 1, 1, 128, 128>}]} {
    %c0 = arith.constant 0 : index
    %c0_0 = arith.constant 0 : index
    %c0_1 = arith.constant 0 : index
    %0 = vector.load %arg2[%c0, %c0_0, %c0_1] : memref<1x128x128xf32, #tpu.memory_space<vmem>>, vector<1x128x128xf32>
    %1 = vector.shape_cast %0 : vector<1x128x128xf32> to vector<128x128xf32>
    %c0_2 = arith.constant 0 : index
    %c0_3 = arith.constant 0 : index
    %c0_4 = arith.constant 0 : index
    %2 = vector.load %arg4[%c0_2, %c0_3, %c0_4] : memref<1x128x32xf32, #tpu.memory_space<vmem>>, vector<1x128x32xf32>
    %3 = vector.shape_cast %2 : vector<1x128x32xf32> to vector<128x32xf32>
    %cst = arith.constant dense<0.000000e+00> : vector<128x32xf32>
    %4 = tpu.matmul %1, %3, %cst {dimension_numbers = #tpu.dot_dimension_numbers<[1], [0], [0], [1], [0, 0, 1, 1], [], []>} : vector<128x128xf32>, vector<128x32xf32>, vector<128x32xf32> -> vector<128x32xf32>
    %c0_5 = arith.constant 0 : index
    %c0_6 = arith.constant 0 : index
    %c0_7 = arith.constant 0 : index
    %5 = vector.load %arg7[%c0_5, %c0_6, %c0_7] : memref<1x1x32xf32, #tpu.memory_space<vmem>>, vector<1x1x32xf32>
    %6 = vector.shape_cast %5 : vector<1x1x32xf32> to vector<1x32xf32>
    %7 = vector.broadcast %6 : vector<1x32xf32> to vector<128x32xf32>
    %8 = arith.addf %4, %7 : vector<128x32xf32>
    %c0_8 = arith.constant 0 : index
    %c0_9 = arith.constant 0 : index
    %c0_10 = arith.constant 0 : index
    %9 = vector.load %arg5[%c0_8, %c0_9, %c0_10] : memref<1x128x32xf32, #tpu.memory_space<vmem>>, vector<1x128x32xf32>
    %10 = vector.shape_cast %9 : vector<1x128x32xf32> to vector<128x32xf32>
    %cst_11 = arith.constant dense<0.000000e+00> : vector<128x32xf32>
    %11 = tpu.matmul %1, %10, %cst_11 {dimension_numbers = #tpu.dot_dimension_numbers<[1], [0], [0], [1], [0, 0, 1, 1], [], []>} : vector<128x128xf32>, vector<128x32xf32>, vector<128x32xf32> -> vector<128x32xf32>
    %c0_12 = arith.constant 0 : index
    %c0_13 = arith.constant 0 : index
    %c0_14 = arith.constant 0 : index
    %12 = vector.load %arg8[%c0_12, %c0_13, %c0_14] : memref<1x1x32xf32, #tpu.memory_space<vmem>>, vector<1x1x32xf32>
    %13 = vector.shape_cast %12 : vector<1x1x32xf32> to vector<1x32xf32>
    %14 = vector.broadcast %13 : vector<1x32xf32> to vector<128x32xf32>
    %15 = arith.addf %11, %14 : vector<128x32xf32>
    %c0_15 = arith.constant 0 : index
    %c0_16 = arith.constant 0 : index
    %c0_17 = arith.constant 0 : index
    %16 = vector.load %arg6[%c0_15, %c0_16, %c0_17] : memref<1x128x32xf32, #tpu.memory_space<vmem>>, vector<1x128x32xf32>
    %17 = vector.shape_cast %16 : vector<1x128x32xf32> to vector<128x32xf32>
    %cst_18 = arith.constant dense<0.000000e+00> : vector<128x32xf32>
    %18 = tpu.matmul %1, %17, %cst_18 {dimension_numbers = #tpu.dot_dimension_numbers<[1], [0], [0], [1], [0, 0, 1, 1], [], []>} : vector<128x128xf32>, vector<128x32xf32>, vector<128x32xf32> -> vector<128x32xf32>
    %c0_19 = arith.constant 0 : index
    %c0_20 = arith.constant 0 : index
    %c0_21 = arith.constant 0 : index
    %19 = vector.load %arg9[%c0_19, %c0_20, %c0_21] : memref<1x1x32xf32, #tpu.memory_space<vmem>>, vector<1x1x32xf32>
    %20 = vector.shape_cast %19 : vector<1x1x32xf32> to vector<1x32xf32>
    %21 = vector.broadcast %20 : vector<1x32xf32> to vector<128x32xf32>
    %22 = arith.addf %18, %21 : vector<128x32xf32>
    %cst_22 = arith.constant dense<0.000000e+00> : vector<128x128xf32>
    %23 = tpu.matmul %15, %8, %cst_22 {dimension_numbers = #tpu.dot_dimension_numbers<[1], [1], [0], [0], [0, 0, 1, 0], [], []>} : vector<128x32xf32>, vector<128x32xf32>, vector<128x128xf32> -> vector<128x128xf32>
    %c0_23 = arith.constant 0 : index
    %c0_24 = arith.constant 0 : index
    %c0_25 = arith.constant 0 : index
    %c0_26 = arith.constant 0 : index
    %24 = vector.load %arg3[%c0_23, %c0_24, %c0_25, %c0_26] : memref<1x1x128x128xf32, #tpu.memory_space<vmem>>, vector<1x1x128x128xf32>
    %25 = vector.shape_cast %24 : vector<1x1x128x128xf32> to vector<128x128xf32>
    %26 = arith.addf %23, %25 : vector<128x128xf32>
    %c0_27 = arith.constant 0 : index
    %c0_28 = arith.constant 0 : index
    %c0_29 = arith.constant 0 : index
    %c0_30 = arith.constant 0 : index
    %27 = vector.load %arg13[%c0_27, %c0_28, %c0_29, %c0_30] : memref<1x1x128x128xf32, #tpu.memory_space<vmem>>, vector<1x1x128x128xf32>
    %28 = vector.shape_cast %27 : vector<1x1x128x128xf32> to vector<128x128xf32>
    %29 = vector.shape_cast %26 : vector<128x128xf32> to vector<1x1x128x128xf32>
    tpu.vector_store %arg13[%c0_27, %c0_28, %c0_29, %c0_30], %29 {strides = array<i32>} : memref<1x1x128x128xf32, #tpu.memory_space<vmem>>, vector<1x1x128x128xf32>,
    %cst_31 = arith.constant dense<0xFF800000> : vector<128xf32>
    %30 = vector.multi_reduction <maximumf>, %26, %cst_31 [1] : vector<128x128xf32> to vector<128xf32>
    %31 = vector.shape_cast %30 : vector<128xf32> to vector<128x1xf32>
    %32 = vector.broadcast %31 : vector<128x1xf32> to vector<128x128xf32>
    %33 = arith.subf %26, %32 : vector<128x128xf32>
    %34 = math.exp %33 : vector<128x128xf32>
    %cst_32 = arith.constant dense<0.000000e+00> : vector<128xf32>
    %35 = vector.multi_reduction <add>, %34, %cst_32 [1] : vector<128x128xf32> to vector<128xf32>
    %36 = vector.shape_cast %35 : vector<128xf32> to vector<128x1xf32>
    %37 = tpu.reciprocal %36 {approx = true} : vector<128x1xf32> -> vector<128x1xf32>
    %38 = vector.broadcast %37 : vector<128x1xf32> to vector<128x128xf32>
    %39 = arith.mulf %34, %38 : vector<128x128xf32>
    %cst_33 = arith.constant dense<0.000000e+00> : vector<128x32xf32>
    %40 = tpu.matmul %39, %22, %cst_33 {dimension_numbers = #tpu.dot_dimension_numbers<[1], [0], [0], [1], [0, 0, 1, 1], [], []>} : vector<128x128xf32>, vector<128x32xf32>, vector<128x32xf32> -> vector<128x32xf32>
    %c0_i32 = arith.constant 0 : i32
    %41 = arith.cmpi eq, %arg1, %c0_i32 : i32
    %42 = arith.extui %41 : i1 to i32
    %c0_i32_34 = arith.constant 0 : i32
    %43 = arith.cmpi ne, %42, %c0_i32_34 : i32
    scf.if %43 {
      %c0_45 = arith.constant 0 : index
      %c0_46 = arith.constant 0 : index
      %53 = vector.load %arg11[%c0_45, %c0_46] : memref<1x128xf32, #tpu.memory_space<vmem>>, vector<1x128xf32>
      %54 = vector.shape_cast %53 : vector<1x128xf32> to vector<1x128xf32>
      %55 = vector.broadcast %54 : vector<1x128xf32> to vector<128x128xf32>
      %c0_47 = arith.constant 0 : index
      %c0_48 = arith.constant 0 : index
      %c0_49 = arith.constant 0 : index
      %56 = vector.load %arg12[%c0_47, %c0_48, %c0_49] : memref<1x128x128xf32, #tpu.memory_space<vmem>>, vector<1x128x128xf32>
      %57 = vector.shape_cast %56 : vector<1x128x128xf32> to vector<128x128xf32>
      %58 = vector.shape_cast %55 : vector<128x128xf32> to vector<1x128x128xf32>
      tpu.vector_store %arg12[%c0_47, %c0_48, %c0_49], %58 {strides = array<i32>} : memref<1x128x128xf32, #tpu.memory_space<vmem>>, vector<1x128x128xf32>,
    } else {
    }
    %c0_35 = arith.constant 0 : index
    %c0_36 = arith.constant 0 : index
    %c0_37 = arith.constant 0 : index
    %44 = vector.load %arg12[%c0_35, %c0_36, %c0_37] : memref<1x128x128xf32, #tpu.memory_space<vmem>>, vector<1x128x128xf32>
    %45 = vector.shape_cast %44 : vector<1x128x128xf32> to vector<128x128xf32>
    %c0_38 = arith.constant 0 : index
    %c0_39 = arith.constant 0 : index
    %c0_40 = arith.constant 0 : index
    %46 = vector.load %arg10[%c0_38, %c0_39, %c0_40] : memref<1x32x128xf32, #tpu.memory_space<vmem>>, vector<1x32x128xf32>
    %47 = vector.shape_cast %46 : vector<1x32x128xf32> to vector<32x128xf32>
    %cst_41 = arith.constant dense<0.000000e+00> : vector<128x128xf32>
    %48 = tpu.matmul %40, %47, %cst_41 {dimension_numbers = #tpu.dot_dimension_numbers<[1], [0], [0], [1], [0, 0, 1, 1], [], []>} : vector<128x32xf32>, vector<32x128xf32>, vector<128x128xf32> -> vector<128x128xf32>
    %49 = arith.addf %45, %48 : vector<128x128xf32>
    %c0_42 = arith.constant 0 : index
    %c0_43 = arith.constant 0 : index
    %c0_44 = arith.constant 0 : index
    %50 = vector.load %arg12[%c0_42, %c0_43, %c0_44] : memref<1x128x128xf32, #tpu.memory_space<vmem>>, vector<1x128x128xf32>
    %51 = vector.shape_cast %50 : vector<1x128x128xf32> to vector<128x128xf32>
    %52 = vector.shape_cast %49 : vector<128x128xf32> to vector<1x128x128xf32>
    tpu.vector_store %arg12[%c0_42, %c0_43, %c0_44], %52 {strides = array<i32>} : memref<1x128x128xf32, #tpu.memory_space<vmem>>, vector<1x128x128xf32>,
    return
  }
  func.func @transform_0(%arg0: i32, %arg1: i32) -> (i32, i32, i32) {
    %c0_i32 = arith.constant 0 : i32
    %c0_i32_0 = arith.constant 0 : i32
    %c0_i32_1 = arith.constant 0 : i32
    return %arg0, %c0_i32, %c0_i32_0 : i32, i32, i32
  }
  func.func @transform_1(%arg0: i32, %arg1: i32) -> (i32, i32, i32, i32) {
    %c0_i32 = arith.constant 0 : i32
    %c0_i32_0 = arith.constant 0 : i32
    %c0_i32_1 = arith.constant 0 : i32
    return %arg0, %arg1, %c0_i32, %c0_i32_0 : i32, i32, i32, i32
  }
  func.func @transform_2(%arg0: i32, %arg1: i32) -> (i32, i32, i32) {
    %c0_i32 = arith.constant 0 : i32
    %c0_i32_0 = arith.constant 0 : i32
    %c0_i32_1 = arith.constant 0 : i32
    return %arg1, %c0_i32, %c0_i32_0 : i32, i32, i32
  }
  func.func @transform_3(%arg0: i32, %arg1: i32) -> (i32, i32, i32) {
    %c0_i32 = arith.constant 0 : i32
    %c0_i32_0 = arith.constant 0 : i32
    %c0_i32_1 = arith.constant 0 : i32
    return %arg1, %c0_i32, %c0_i32_0 : i32, i32, i32
  }
  func.func @transform_4(%arg0: i32, %arg1: i32) -> (i32, i32, i32) {
    %c0_i32 = arith.constant 0 : i32
    %c0_i32_0 = arith.constant 0 : i32
    %c0_i32_1 = arith.constant 0 : i32
    return %arg1, %c0_i32, %c0_i32_0 : i32, i32, i32
  }
  func.func @transform_5(%arg0: i32, %arg1: i32) -> (i32, i32, i32) {
    %c0_i32 = arith.constant 0 : i32
    %c0_i32_0 = arith.constant 0 : i32
    %c0_i32_1 = arith.constant 0 : i32
    return %arg1, %c0_i32, %c0_i32_0 : i32, i32, i32
  }
  func.func @transform_6(%arg0: i32, %arg1: i32) -> (i32, i32, i32) {
    %c0_i32 = arith.constant 0 : i32
    %c0_i32_0 = arith.constant 0 : i32
    %c0_i32_1 = arith.constant 0 : i32
    return %arg1, %c0_i32, %c0_i32_0 : i32, i32, i32
  }
  func.func @transform_7(%arg0: i32, %arg1: i32) -> (i32, i32, i32) {
    %c0_i32 = arith.constant 0 : i32
    %c0_i32_0 = arith.constant 0 : i32
    %c0_i32_1 = arith.constant 0 : i32
    return %arg1, %c0_i32, %c0_i32_0 : i32, i32, i32
  }
  func.func @transform_8(%arg0: i32, %arg1: i32) -> (i32, i32, i32) {
    %c0_i32 = arith.constant 0 : i32
    %c0_i32_0 = arith.constant 0 : i32
    %c0_i32_1 = arith.constant 0 : i32
    return %arg1, %c0_i32, %c0_i32_0 : i32, i32, i32
  }
  func.func @transform_9(%arg0: i32, %arg1: i32) -> (i32, i32) {
    %c0_i32 = arith.constant 0 : i32
    %c0_i32_0 = arith.constant 0 : i32
    %c0_i32_1 = arith.constant 0 : i32
    return %c0_i32, %c0_i32_0 : i32, i32
  }
  func.func @transform_10(%arg0: i32, %arg1: i32) -> (i32, i32, i32) {
    %c0_i32 = arith.constant 0 : i32
    %c0_i32_0 = arith.constant 0 : i32
    %c0_i32_1 = arith.constant 0 : i32
    return %arg0, %c0_i32, %c0_i32_0 : i32, i32, i32
  }
  func.func @transform_11(%arg0: i32, %arg1: i32) -> (i32, i32, i32, i32) {
    %c0_i32 = arith.constant 0 : i32
    %c0_i32_0 = arith.constant 0 : i32
    %c0_i32_1 = arith.constant 0 : i32
    return %arg0, %arg1, %c0_i32, %c0_i32_0 : i32, i32, i32, i32
  }
}

</mosaic_0001>

<bundles_post_ra>
// kernel: tpu_custom_call.1
= control target key start
LH: loop header
LB: loop body
LE: loop exit
PB: predicated region body
PF: predicated region fallthrough
CT: control target
= control target key end

     0   :  { %s4138_s0 = inlined_call_operand.vmem [shape: f32[2,128,128], index: 0, kind: input, shape index: {}]   ;;  %s4139_s1 = inlined_call_operand.vmem [shape: f32[2,4,128,128], index: 1, kind: input, shape index: {}]   ;;  %s4140_s2 = inlined_call_operand.vmem [shape: f32[4,128,32], index: 2, kind: input, shape index: {}]   ;;  %s4141_s3 = inlined_call_operand.vmem [shape: f32[4,128,32], index: 3, kind: input, shape index: {}]   ;;  %s4142_s4 = inlined_call_operand.vmem [shape: f32[4,128,32], index: 4, kind: input, shape index: {}]   ;;  %s4143_s5 = inlined_call_operand.vmem [shape: f32[4,1,32], index: 5, kind: input, shape index: {}]   ;;  %s4144_s6 = inlined_call_operand.vmem [shape: f32[4,1,32], index: 6, kind: input, shape index: {}]   ;;  %s4145_s7 = inlined_call_operand.vmem [shape: f32[4,1,32], index: 7, kind: input, shape index: {}]   ;;  %s4146_s8 = inlined_call_operand.vmem [shape: f32[4,32,128], index: 8, kind: input, shape index: {}]   ;;  %s4147_s9 = inlined_call_operand.vmem [shape: f32[1,128], index: 9, kind: input, shape index: {}]   ;;  %s4148_s10 = inlined_call_operand.hbm [shape: f32[2,128,128], index: 10, kind: output, shape index: {0}]   ;;  %s4149_s11 = inlined_call_operand.hbm [shape: f32[2,4,128,128], index: 11, kind: output, shape index: {1}]  }
   0x1   :  { %4161 = sst [smem:[#allocation16_spill]] %s4138_s0 }
   0x2   :  { %4162 = sst [smem:[#allocation17_spill]] %s4140_s2 }
   0x3   :  { %4163 = sst [smem:[#allocation18_spill]] %s4146_s8 }
   0x4   :  { %4164 = sst [smem:[#allocation19_spill]] %s4147_s9 }
   0x5   :  { %4165 = sst [smem:[#allocation20_spill]] %s4148_s10 }
   0x6   :  { %4166 = sst [smem:[#allocation21_spill]] %s4149_s11 }
   0x7   :  { %17 = vsyncpa [#allocation3], 0 }
   0x8   :  { %19 = vsyncpa [#allocation3 + $0x1], 0 }
   0x9   :  { %20 = vsyncpa [#allocation5], 0 }
   0xa   :  { %22 = vsyncpa [#allocation5 + $0x1], 0  ;;  %s3324_s17 = smov 0   ;;  %s3326_s18 = smov 0  }
   0xb   :  { %s3328_s19 = smov 0   ;;  %s3330_s20 = smov 0  }
   0xc   :  { %s3332_s21 = smov 0   ;;  %s3334_s22 = smov 0  }
   0xd   :  { %s3336_s23 = smov 0   ;;  %s3338_s24 = smov 0  }
   0xe   :  { %s3340_s25 = smov 0   ;;  %s3342_s26 = smov 0  }
   0xf   :  { %s3344_s27 = smov 0  }
  0x10 LB: > { %4167 = sst [smem:[#allocation8_spill]] %s3230_s20  ;;  %s2162_s28 = sadd.s32 4294967295, %s3258_s27   ;;  %s3258_s27 = sphi %s3344_s27, %s28_s27   ;;  %s3254_s26 = sphi %s3342_s26, %s4198_s26   ;;  %s3250_s25 = sphi %s3340_s25, %s4204_s25   ;;  %s3246_s24 = sphi %s3338_s24, %s4196_s24   ;;  %s3242_s23 = sphi %s3336_s23, %s4195_s23   ;;  %s3238_s22 = sphi %s3334_s22, %s4194_s22   ;;  %s3234_s21 = sphi %s3332_s21, %s4203_s21   ;;  %s3230_s20 = sphi %s3330_s20, %s4202_s20   ;;  %s3226_s19 = sphi %s3328_s19, %s4201_s19   ;;  %s3222_s18 = sphi %s3326_s18, %s4200_s18   ;;  %s3218_s17 = sphi %s3324_s17, %s4199_s17  }
  0x11   : > { %4168 = sst [smem:[#allocation9_spill]] %s3238_s22  ;;  %s2163_s29 = sadd.s32 4294967294, %s3258_s27  }
  0x12   : > { %4169 = sst [smem:[#allocation10_spill]] %s3250_s25  ;;  %s37_s30 = sadd.s32 1, %s3250_s25 }
  0x13   : > { %4170 = sst [smem:[#allocation11_spill]] %s3254_s26  ;;  %s40_s12 = sadd.s32 1, %s3254_s26 }
  0x14   : > { %p38_p0 = scmp.ge.s32.totalorder %s37_s30, 4  ;;  %s304_s13 = sadd.s32 1, %s3238_s22 }
  0x15   : > { %p314_p1 = scmp.ne.s32.totalorder %s3238_s22, %s3234_s21  ;;  %p3386_p2 = scmp.eq.s32.totalorder %s2162_s28, 7 }
  0x16   : > { %s4206_s30 = smov (%p38_p0, %s37_s30), 0  ;;  %s4208_s12 = smov (!%p38_p0, %s40_s12), %s3254_s26 }
  0x17   : > { %4172 = sst [smem:[#allocation12_spill]] %s4206_s30  ;;  %p3395_p3 = por %p3386_p2, %p314_p1 }
  0x18   : > { %p320_p4 = scmp.ne.s32.totalorder %s3234_s21, %s3230_s20  ;;  %p42_p5 = scmp.ge.s32.totalorder %s4208_s12, 2 }
  0x19   : > { %s4173_s15 = scalar_select %p3395_p3, 1, 0 }
  0x1a   : > { %p3401_p6 = scmp.eq.s32.totalorder %s2163_s29, 7  ;;  %s328_s28 = ssub.s32 %s3250_s25, %s4206_s30 }
  0x1b   : > { %4174 = sst [smem:[#allocation13_spill]] %s4173_s15  ;;  %s332_s10 = sadd.s32 1, %s3226_s19 }
  0x1c   : > { %s4210_s12 = smov (%p42_p5, %s4208_s12), 0  ;;  %p3412_p7 = por %p3401_p6, %p320_p4 }
  0x1d   : > { %4176 = sst [smem:[#allocation14_spill]] %s4210_s12  ;;  %p342_p8 = scmp.ne.s32.totalorder %s3226_s19, %s3222_s18 }
  0x1e   : > { %s301_s20 = ssub.s32 %s3254_s26, %s4210_s12  ;;  %p348_p9 = scmp.ne.s32.totalorder %s3222_s18, %s3218_s17 }
  0x1f   : > { %p302_p10 = scmp.eq.s32.totalorder %s301_s20, 0  ;;  %s329_s29 = sor.u32 %s328_s28, %s301_s20 }
  0x20   : > { %p330_p11 = scmp.eq.s32.totalorder %s329_s29, 0  ;;  %p3424_p12 = por %p342_p8, %p3386_p2 }
  0x21   : > { %s3429_s30 = scalar_select %p302_p10, %s3238_s22, %s304_s13  }
  0x22   : > { %s3432_s25 = scalar_select %p330_p11, %s3226_s19, %s332_s10  }
  0x23   : > { %4179 = sst [smem:[#allocation15_spill]] %s3429_s30  ;;  %p3436_p13 = por %p348_p9, %p3401_p6 }
  0x24   : > { %p2166_p0 = scmp.ge.s32.totalorder %s3258_s27, 1  ;;  %p440_p1 = scmp.lt.s32.totalorder %s3258_s27, 9 }
  0x26   : > { %p441_p4 = pnand %p2166_p0, %p440_p1 }
  0x27   : > { %s4159_s20 = sand.u32 (!%p441_p4), 1, %s3234_s21   ;;  %p530_p2 = scmp.lt.s32.totalorder (!%p441_p4), %s3242_s23, 3  ;;  %vm1102_vm0 = vcmask (!%p441_p4), 261120  }
  0x28   : > { %444 = sbr.rel (%p441_p4) target bundleno = 1418 (0x58a), region = 60  ;;  %s3446_s10 = sshll.u32 (!%p441_p4), %s4159_s20, 7  ;;  %vm3605_vm1 = vmpackc.low (!%p441_p4), %vm1102_vm0, %vm1102_vm0 }
  0x29   : > { %p523_p5 = scmp.lt.s32.totalorder (!%p441_p4), %s3246_s24, 1  ;;  %s4181_s2 = sld [smem:[#allocation17_spill]] (!%p441_p4) }
  0x2a   : > { %s4182_s8 = sld [smem:[#allocation18_spill]] (!%p441_p4)  ;;  %s4183_s0 = sld [smem:[#allocation16_spill]] (!%p441_p4) }
  0x2b   : > { %s520_s30 = sand.u32 (!%p441_p4), 1, %s3222_s18   ;;  %p2217_p6 = scmp.ne.s32.totalorder (!%p441_p4), %s3242_s23, 0 }
  0x2f   : > { %s3450_s13 = scalar_select %p530_p2, %s3242_s23, 3 }
  0x30   : > { %s3453_s14 = scalar_select %p523_p5, %s3246_s24, 1 }
  0x31   : > { %s3456_s16 = sshll.u32 %s3450_s13, 7  ;;  %s2248_s28 = sshll.u32 %s3450_s13, 5 }
  0x32   : > { %s3463_s26 = scalar_lea.vmem %s4181_s2, %s3456_s16  ;;  %s3468_s22 = scalar_lea.vmem %s4182_s8, %s2248_s28 }
  0x33   : > { %v582_v0 = vld [vmem:[%s3463_s26] sm:$0xff]  ;;  %v583_v1 = vld [vmem:[%s3463_s26 + $0x8] sm:$0xff]  ;;  %v584_v2 = vld [vmem:[%s3463_s26 + $0x10] sm:$0xff]  ;;  %s2244_s12 = sshll.u32 %s3453_s14, 7  ;;  %s3489_s8 = scalar_lea.vmem %s4141_s3, %s3456_s16 }
  0x34   : > { %v2742_v3 = vpack.c.bf16 %v583_v1, %v582_v0  ;;  %v585_v4 = vld [vmem:[%s3463_s26 + $0x18] sm:$0xff]  ;;  %v586_v6 = vld [vmem:[%s3463_s26 + $0x20] sm:$0xff]  ;;  %v587_v7 = vld [vmem:[%s3463_s26 + $0x28] sm:$0xff]  ;;  %s3480_s29 = scalar_lea.vmem %s4183_s0, %s2244_s12  ;;  %s557_s20 = scalar_lea.vmem %s4144_s6, %s3450_s13 }
  0x35   : > { %v2746_v5 = vpack.c.bf16 %v585_v4, %v584_v2  ;;  %v2750_v8 = vpack.c.bf16 %v587_v7, %v586_v6  ;;  %v3483_v9 = vld [vmem:[%s3480_s29] sm:$0xff]  ;;  %v588_v10 = vld [vmem:[%s3463_s26 + $0x30] sm:$0xff]  ;;  %v589_v11 = vld [vmem:[%s3463_s26 + $0x38] sm:$0xff]  ;;  %s3703_s2 = scalar_lea.vmem %s4142_s4, %s3456_s16  ;;  %s2171_s16 = sshll.u32 %s3450_s13, 4 }
  0x36   : > { %2743 = vmatprep.subr.bf16.mxu0 %v2742_v3  ;;  %2462 = vmatprep.mubr.f32.mxu0 %v3483_v9  ;;  %v750_v12 = vld [vmem:[%s3489_s8] sm:$0xff]  ;;  %v2754_v13 = vpack.c.bf16 %v589_v11, %v588_v10  ;;  %v751_v14 = vld [vmem:[%s3489_s8 + $0x8] sm:$0xff]  ;;  %v752_v15 = vld [vmem:[%s3489_s8 + $0x10] sm:$0xff] }
  0x37   : > { %2745 = vmatpush3.bf16.msra.mxu0 %v2742_v3  ;;  %2518 = vmatprep.mubr.f32.mxu1 %v3483_v9  ;;  %v753_v16 = vld [vmem:[%s3489_s8 + $0x18] sm:$0xff]  ;;  %v590_v17 = vld [vmem:[%s3463_s26 + $0x40] sm:$0xff]  ;;  %v591_v18 = vld [vmem:[%s3463_s26 + $0x48] sm:$0xff]  ;;  %v2774_v19 = vpack.c.bf16 %v751_v14, %v750_v12 }
  0x38   : > { %2747 = vmatprep.subr.bf16.mxu0 %v2746_v5  ;;  %v2778_v20 = vpack.c.bf16 %v753_v16, %v752_v15  ;;  %v754_v21 = vld [vmem:[%s3489_s8 + $0x20] sm:$0xff]  ;;  %v755_v22 = vld [vmem:[%s3489_s8 + $0x28] sm:$0xff]  ;;  %v2758_v23 = vpack.c.bf16 %v591_v18, %v590_v17  ;;  %v592_v24 = vld [vmem:[%s3463_s26 + $0x50] sm:$0xff] }
  0x39   : > { %2775 = vmatprep.subr.bf16.mxu1 %v2774_v19  ;;  %v593_v25 = vld [vmem:[%s3463_s26 + $0x58] sm:$0xff]  ;;  %v2782_v26 = vpack.c.bf16 %v755_v22, %v754_v21  ;;  %v756_v27 = vld [vmem:[%s3489_s8 + $0x30] sm:$0xff]  ;;  %v594_v30 = vld [vmem:[%s3463_s26 + $0x60] sm:$0xff] }
  0x3a   : > { %2777 = vmatpush3.bf16.msra.mxu1 %v2774_v19  ;;  %v757_v28 = vld [vmem:[%s3489_s8 + $0x38] sm:$0xff]  ;;  %v2762_v29 = vpack.c.bf16 %v593_v25, %v592_v24  ;;  %v595_v31 = vld [vmem:[%s3463_s26 + $0x68] sm:$0xff]  ;;  %v758_v33 = vld [vmem:[%s3489_s8 + $0x40] sm:$0xff] }
  0x3b   : > { %2749 = vmatpush3.bf16.msra.mxu0 %v2746_v5  ;;  %2779 = vmatprep.subr.bf16.mxu1 %v2778_v20  ;;  %v2786_v32 = vpack.c.bf16 %v757_v28, %v756_v27  ;;  %v759_v34 = vld [vmem:[%s3489_s8 + $0x48] sm:$0xff]  ;;  %v2766_v35 = vpack.c.bf16 %v595_v31, %v594_v30  ;;  %v596_v36 = vld [vmem:[%s3463_s26 + $0x70] sm:$0xff]  ;;  %v597_v37 = vld [vmem:[%s3463_s26 + $0x78] sm:$0xff]  ;;  %s554_s26 = scalar_lea.vmem %s4143_s5, %s3450_s13 }
  0x3c   : > { %2751 = vmatprep.subr.bf16.mxu0 %v2750_v8  ;;  %v2790_v38 = vpack.c.bf16 %v759_v34, %v758_v33  ;;  %v760_v39 = vld [vmem:[%s3489_s8 + $0x50] sm:$0xff]  ;;  %v761_v40 = vld [vmem:[%s3489_s8 + $0x58] sm:$0xff]  ;;  %v2770_v41 = vpack.c.bf16 %v597_v37, %v596_v36  ;;  %v762_v43 = vld [vmem:[%s3489_s8 + $0x60] sm:$0xff] }
  0x3d   : > { %v2794_v42 = vpack.c.bf16 %v761_v40, %v760_v39  ;;  %v763_v44 = vld [vmem:[%s3489_s8 + $0x68] sm:$0xff]  ;;  %v764_v46 = vld [vmem:[%s3489_s8 + $0x70] sm:$0xff]  ;;  %v765_v47 = vld [vmem:[%s3489_s8 + $0x78] sm:$0xff]  ;;  %s2172_s8 = sshll.u32 %s3453_s14, 6 }
  0x3e   : > { %2781 = vmatpush3.bf16.msra.mxu1 %v2778_v20  ;;  %v2798_v45 = vpack.c.bf16 %v763_v44, %v762_v43  ;;  %v3520_v48 = vld [vmem:[%s3480_s29 + $0x8] sm:$0xff]  ;;  %v3523_v49 = vld [vmem:[%s3480_s29 + $0x10] sm:$0xff]  ;;  %v2802_v50 = vpack.c.bf16 %v765_v47, %v764_v46  ;;  %v3528_v51 = vld [vmem:[%s3480_s29 + $0x18] sm:$0xff] }
  0x3f   : > { %2753 = vmatpush3.bf16.msra.mxu0 %v2750_v8  ;;  %2783 = vmatprep.subr.bf16.mxu1 %v2782_v26  ;;  %v3531_v52 = vld [vmem:[%s3480_s29 + $0x20] sm:$0xff]  ;;  %v3536_v53 = vld [vmem:[%s3480_s29 + $0x28] sm:$0xff]  ;;  %v3539_v54 = vld [vmem:[%s3480_s29 + $0x30] sm:$0xff] }
  0x40   : > { %2755 = vmatprep.subr.bf16.mxu0 %v2754_v13  ;;  %v3544_v55 = vld [vmem:[%s3480_s29 + $0x38] sm:$0xff]  ;;  %v3548_v56 = vld [vmem:[%s3480_s29 + $0x40] sm:$0xff]  ;;  %v3554_v57 = vld [vmem:[%s3480_s29 + $0x48] sm:$0xff] }
  0x41   : > { %v3558_v58 = vld [vmem:[%s3480_s29 + $0x50] sm:$0xff]  ;;  %v3564_v59 = vld [vmem:[%s3480_s29 + $0x58] sm:$0xff]  ;;  %v3568_v60 = vld [vmem:[%s3480_s29 + $0x60] sm:$0xff] }
  0x42   : > { %2785 = vmatpush3.bf16.msra.mxu1 %v2782_v26  ;;  %v3574_v61 = vld [vmem:[%s3480_s29 + $0x68] sm:$0xff]  ;;  %v3578_v62 = vld [vmem:[%s3480_s29 + $0x70] sm:$0xff]  ;;  %v3584_v63 = vld [vmem:[%s3480_s29 + $0x78] sm:$0xff]  ;;  %s4186_s29 = sld [smem:[#allocation19_spill]] (!%p2217_p6) }
  0x43   : > { %2757 = vmatpush3.bf16.msra.mxu0 %v2754_v13  ;;  %2787 = vmatprep.subr.bf16.mxu1 %v2786_v32  ;;  %v3599_v0 = vld [vmem:[%s554_s26] ss:$0 sm:$0xff]  ;;  %s534_s26 = sadd.s32 %s2172_s8, %s2171_s16 }
  0x44   : > { %2759 = vmatprep.subr.bf16.mxu0 %v2758_v23  ;;  %v3619_v13 = vld [vmem:[%s557_s20] ss:$0 sm:$0xff]  ;;  %s2173_s12 = sshll.u32 %s534_s26, 3  ;;  %s560_s26 = scalar_lea.vmem %s4145_s7, %s3450_s13 }
  0x45   : > { %v918_v5 = vld [vmem:[%s3703_s2] sm:$0xff]  ;;  %s3742_s28 = scalar_lea.vmem %s4139_s1, %s2173_s12  ;;  %s3947_s13 = scalar_lea.vmem [#allocation2], %s3446_s10 }
  0x46   : > { %2789 = vmatpush3.bf16.msra.mxu1 %v2786_v32 }
  0x47   : > { %2761 = vmatpush3.bf16.msra.mxu0 %v2758_v23  ;;  %2791 = vmatprep.subr.bf16.mxu1 %v2790_v38 }
  0x48   : > { %2763 = vmatprep.subr.bf16.mxu0 %v2762_v29 }
  0x4a   : > { %2793 = vmatpush3.bf16.msra.mxu1 %v2790_v38 }
  0x4b   : > { %2765 = vmatpush3.bf16.msra.mxu0 %v2762_v29  ;;  %2795 = vmatprep.subr.bf16.mxu1 %v2794_v42 }
  0x4c   : > { %2767 = vmatprep.subr.bf16.mxu0 %v2766_v35 }
  0x4e   : > { %2797 = vmatpush3.bf16.msra.mxu1 %v2794_v42 }
  0x4f   : > { %2769 = vmatpush3.bf16.msra.mxu0 %v2766_v35  ;;  %2799 = vmatprep.subr.bf16.mxu1 %v2798_v45 }
  0x50   : > { %2771 = vmatprep.subr.bf16.mxu0 %v2770_v41 }
  0x52   : > { %2801 = vmatpush3.bf16.msra.mxu1 %v2798_v45 }
  0x53   : > { %2773 = vmatpush3.bf16.msra.mxu0 %v2770_v41  ;;  %2803 = vmatprep.subr.bf16.mxu1 %v2802_v50 }
  0x56   : > { %2463 = vmatmul.mubr.f32.vlgmr.msra.gmra.mrb[0].mxu0 %v3520_v48  ;;  %2805 = vmatpush3.bf16.msra.mxu1 %v2802_v50 }
  0x57   : > { %2465 = vmatprep.mubr.f32.mxu0 %v3523_v49 }
  0x59   : > { %2519 = vmatmul.mubr.f32.vlgmr.msra.gmra.mrb[0].mxu1 %v3520_v48 }
  0x5a   : > { %2466 = vmatmul.mubr.f32.gmra.mrb[2].mxu0 %v3528_v51  ;;  %2521 = vmatprep.mubr.f32.mxu1 %v3523_v49 }
  0x5b   : > { %2468 = vmatprep.mubr.f32.mxu0 %v3531_v52 }
  0x5d   : > { %2522 = vmatmul.mubr.f32.gmra.mrb[2].mxu1 %v3528_v51 }
  0x5e   : > { %2469 = vmatmul.mubr.f32.gmra.mrb[4].mxu0 %v3536_v53  ;;  %2524 = vmatprep.mubr.f32.mxu1 %v3531_v52 }
  0x5f   : > { %2471 = vmatprep.mubr.f32.mxu0 %v3539_v54 }
  0x61   : > { %2525 = vmatmul.mubr.f32.gmra.mrb[4].mxu1 %v3536_v53 }
  0x62   : > { %2472 = vmatmul.mubr.f32.gmra.mrb[6].mxu0 %v3544_v55  ;;  %2527 = vmatprep.mubr.f32.mxu1 %v3539_v54 }
  0x63   : > { %2474 = vmatprep.mubr.f32.mxu0 %v3548_v56 }
  0x65   : > { %2528 = vmatmul.mubr.f32.gmra.mrb[6].mxu1 %v3544_v55 }
  0x66   : > { %2475 = vmatmul.mubr.f32.gmra.mrb[8].mxu0 %v3554_v57  ;;  %2530 = vmatprep.mubr.f32.mxu1 %v3548_v56 }
  0x67   : > { %2477 = vmatprep.mubr.f32.mxu0 %v3558_v58 }
  0x69   : > { %2531 = vmatmul.mubr.f32.gmra.mrb[8].mxu1 %v3554_v57 }
  0x6a   : > { %2478 = vmatmul.mubr.f32.gmra.mrb[10].mxu0 %v3564_v59  ;;  %2533 = vmatprep.mubr.f32.mxu1 %v3558_v58 }
  0x6b   : > { %2480 = vmatprep.mubr.f32.mxu0 %v3568_v60 }
  0x6d   : > { %2534 = vmatmul.mubr.f32.gmra.mrb[10].mxu1 %v3564_v59 }
  0x6e   : > { %2481 = vmatmul.mubr.f32.gmra.mrb[12].mxu0 %v3574_v61  ;;  %2536 = vmatprep.mubr.f32.mxu1 %v3568_v60 }
  0x6f   : > { %2483 = vmatprep.mubr.f32.mxu0 %v3578_v62 }
  0x71   : > { %2537 = vmatmul.mubr.f32.gmra.mrb[12].mxu1 %v3574_v61 }
  0x72   : > { %2484 = vmatmul.mubr.f32.gmra.mrb[14].mxu0 %v3584_v63  ;;  %2539 = vmatprep.mubr.f32.mxu1 %v3578_v62 }
  0x73   : > { %2574 = vmatprep.mubr.f32.mxu0 %v3483_v9 }
  0x75   : > { %2540 = vmatmul.mubr.f32.gmra.mrb[14].mxu1 %v3584_v63 }
 0x129   : > { %v2464_v1 = vpop.f32.mrb[0].mxu0 }
 0x12a   : > { %v677_v2 = vadd.f32 %v2464_v1, %v3599_v0  ;;  %v671_v3 = vpop.f32.mrb[1].mxu0 }
 0x12b   : > { %v672_v4 = vadd.f32 %v3599_v0, %v671_v3 }
 0x12c   : > { %v3622_v16 = vpop.f32.mrb[0].mxu1 }
 0x12d   : > { %v2838_v6 = vpack.c.bf16 %v677_v2, %v672_v4  ;;  %v2467_v7 = vpop.f32.mrb[2].mxu0  ;;  %v839_v18 = vpop.f32.mrb[1].mxu1 }
 0x12e   : > { %v687_v8 = vadd.f32 %v2467_v7, %v3599_v0  ;;  %v681_v9 = vpop.f32.mrb[3].mxu0  ;;  %v840_v19 = vadd.f32 %v3619_v13, %v839_v18 }
 0x12f   : > { %2840 = vmatprep.subr.msk.bf16.mxu1 %vm3605_vm1, %v2838_v6  ;;  %v682_v10 = vadd.f32 %v3599_v0, %v681_v9 }
 0x130   : > { %2843 = vmatpush3.bf16.xpose.msk.msra.mxu1 %vm3605_vm1, %v2838_v6  ;;  %v3629_v24 = vpop.f32.mrb[2].mxu1  ;;  %2630 = vmatprep.mubr.msk.f32.mxu1 %vm1102_vm0, %v840_v19 }
 0x131   : > { %v2844_v11 = vpack.c.bf16 %v687_v8, %v682_v10  ;;  %v2470_v12 = vpop.f32.mrb[4].mxu0  ;;  %v849_v26 = vpop.f32.mrb[3].mxu1 }
 0x132   : > { %v697_v14 = vadd.f32 %v2470_v12, %v3599_v0  ;;  %v691_v15 = vpop.f32.mrb[5].mxu0 }
 0x133   : > { %2846 = vmatprep.subr.msk.bf16.mxu1 %vm3605_vm1, %v2844_v11  ;;  %v692_v17 = vadd.f32 %v3599_v0, %v691_v15 }
 0x134   : > { %v2526_v31 = vpop.f32.mrb[4].mxu1 }
 0x135   : > { %v2850_v20 = vpack.c.bf16 %v697_v14, %v692_v17  ;;  %v2473_v21 = vpop.f32.mrb[6].mxu0  ;;  %v865_v33 = vadd.f32 %v2526_v31, %v3619_v13  ;;  %v859_v34 = vpop.f32.mrb[5].mxu1 }
 0x136   : > { %v707_v22 = vadd.f32 %v2473_v21, %v3599_v0  ;;  %v701_v23 = vpop.f32.mrb[7].mxu0 }
 0x137   : > { %v702_v25 = vadd.f32 %v3599_v0, %v701_v23 }
 0x138   : > { %2849 = vmatpush3.bf16.xpose.msk.msra.mxu1 %vm3605_vm1, %v2844_v11  ;;  %v2529_v39 = vpop.f32.mrb[6].mxu1 }
 0x139   : > { %2852 = vmatprep.subr.msk.bf16.mxu1 %vm3605_vm1, %v2850_v20  ;;  %v2856_v27 = vpack.c.bf16 %v707_v22, %v702_v25  ;;  %v2476_v28 = vpop.f32.mrb[8].mxu0  ;;  %v875_v41 = vadd.f32 %v2529_v39, %v3619_v13  ;;  %v869_v42 = vpop.f32.mrb[7].mxu1  ;;  %v927_v39 = vld [vmem:[%s3703_s2 + $0x48] sm:$0xff] }
 0x13a   : > { %v717_v29 = vadd.f32 %v2476_v28, %v3599_v0  ;;  %v711_v30 = vpop.f32.mrb[9].mxu0  ;;  %v870_v43 = vadd.f32 %v3619_v13, %v869_v42  ;;  %v845_v28 = vadd.f32 %v3622_v16, %v3619_v13  ;;  %v929_v42 = vld [vmem:[%s3703_s2 + $0x58] sm:$0xff] }
 0x13b   : > { %v712_v32 = vadd.f32 %v3599_v0, %v711_v30  ;;  %v855_v30 = vadd.f32 %v3629_v24, %v3619_v13  ;;  %v920_v24 = vld [vmem:[%s3703_s2 + $0x10] sm:$0xff] }
 0x13c   : > { %v2532_v50 = vpop.f32.mrb[8].mxu1 }
 0x13d   : > { %v2862_v35 = vpack.c.bf16 %v717_v29, %v712_v32  ;;  %v2479_v36 = vpop.f32.mrb[10].mxu0  ;;  %v885_v2 = vadd.f32 %v2532_v50, %v3619_v13  ;;  %v879_v3 = vpop.f32.mrb[9].mxu1  ;;  %v860_v29 = vadd.f32 %v3619_v13, %v859_v34  ;;  %v922_v32 = vld [vmem:[%s3703_s2 + $0x20] sm:$0xff]  ;;  %v924_v34 = vld [vmem:[%s3703_s2 + $0x30] sm:$0xff]  ;;  %v933_v50 = vld [vmem:[%s3703_s2 + $0x78] sm:$0xff] }
 0x13e   : > { %v727_v37 = vadd.f32 %v2479_v36, %v3599_v0  ;;  %v721_v38 = vpop.f32.mrb[11].mxu0  ;;  %v880_v4 = vadd.f32 %v3619_v13, %v879_v3  ;;  %v925_v36 = vld [vmem:[%s3703_s2 + $0x38] sm:$0xff] }
 0x13f   : > { %v722_v40 = vadd.f32 %v3599_v0, %v721_v38  ;;  %v926_v38 = vld [vmem:[%s3703_s2 + $0x40] sm:$0xff] }
 0x140   : > { %2855 = vmatpush3.bf16.xpose.msk.msra.mxu1 %vm3605_vm1, %v2850_v20  ;;  %v2535_v10 = vpop.f32.mrb[10].mxu1 }
 0x141   : > { %2858 = vmatprep.subr.msk.bf16.mxu1 %vm3605_vm1, %v2856_v27  ;;  %v2868_v44 = vpack.c.bf16 %v727_v37, %v722_v40  ;;  %v2482_v45 = vpop.f32.mrb[12].mxu0  ;;  %v895_v12 = vadd.f32 %v2535_v10, %v3619_v13  ;;  %v889_v14 = vpop.f32.mrb[11].mxu1  ;;  %v2818_v37 = vpack.c.bf16 %v925_v36, %v924_v34  ;;  %v2822_v40 = vpack.c.bf16 %v927_v39, %v926_v38 }
 0x142   : > { %v737_v46 = vadd.f32 %v2482_v45, %v3599_v0  ;;  %v731_v47 = vpop.f32.mrb[13].mxu0  ;;  %v890_v15 = vadd.f32 %v3619_v13, %v889_v14  ;;  %v931_v45 = vld [vmem:[%s3703_s2 + $0x68] sm:$0xff]  ;;  %v1094_v14 = vld [vmem:[%s3742_s28 + $0x40] sm:$0xff] }
 0x143   : > { %v732_v1 = vadd.f32 %v3599_v0, %v731_v47  ;;  %v932_v47 = vld [vmem:[%s3703_s2 + $0x70] sm:$0xff] }
 0x144   : > { %v2538_v18 = vpop.f32.mrb[12].mxu1 }
 0x145   : > { %v2874_v6 = vpack.c.bf16 %v737_v46, %v732_v1  ;;  %v2485_v7 = vpop.f32.mrb[14].mxu0  ;;  %v905_v19 = vadd.f32 %v2538_v18, %v3619_v13  ;;  %v899_v20 = vpop.f32.mrb[13].mxu1  ;;  %v2834_v1 = vpack.c.bf16 %v933_v50, %v932_v47 }
 0x146   : > { %v747_v8 = vadd.f32 %v2485_v7, %v3599_v0  ;;  %v741_v9 = vpop.f32.mrb[15].mxu0  ;;  %v900_v21 = vadd.f32 %v3619_v13, %v899_v20  ;;  %v1092_v7 = vld [vmem:[%s3742_s28 + $0x30] sm:$0xff]  ;;  %v1097_v20 = vld [vmem:[%s3742_s28 + $0x58] sm:$0xff] }
 0x147   : > { %v742_v11 = vadd.f32 %v3599_v0, %v741_v9 }
 0x148   : > { %2861 = vmatpush3.bf16.xpose.msk.msra.mxu1 %vm3605_vm1, %v2856_v27  ;;  %v2541_v22 = vpop.f32.mrb[14].mxu1  ;;  %v850_v27 = vadd.f32 %v3619_v13, %v849_v26  ;;  %v921_v26 = vld [vmem:[%s3703_s2 + $0x18] sm:$0xff] }
 0x149   : > { %2864 = vmatprep.subr.msk.bf16.mxu1 %vm3605_vm1, %v2862_v35  ;;  %v2880_v17 = vpack.c.bf16 %v747_v8, %v742_v11  ;;  %v915_v0 = vadd.f32 %v2541_v22, %v3619_v13  ;;  %v909_v23 = vpop.f32.mrb[15].mxu1  ;;  %v2810_v31 = vpack.c.bf16 %v921_v26, %v920_v24  ;;  %v1100_v24 = vld [vmem:[%s3742_s28 + $0x70] sm:$0xff] }
 0x14a   : > { %v910_v25 = vadd.f32 %v3619_v13, %v909_v23  ;;  %v919_v13 = vld [vmem:[%s3703_s2 + $0x8] sm:$0xff] }
 0x14b   : > { %v2806_v16 = vpack.c.bf16 %v919_v13, %v918_v5 }
 0x14d   : > { %2807 = vmatprep.subr.bf16.mxu0 %v2806_v16 }
 0x14e   : > { %2809 = vmatpush3.bf16.msra.mxu0 %v2806_v16  ;;  %v1101_v16 = vld [vmem:[%s3742_s28 + $0x78] sm:$0xff] }
 0x14f   : > { %2811 = vmatprep.subr.bf16.mxu0 %v2810_v31 }
 0x150   : > { %2867 = vmatpush3.bf16.xpose.msk.msra.mxu1 %vm3605_vm1, %v2862_v35 }
 0x151   : > { %2870 = vmatprep.subr.msk.bf16.mxu1 %vm3605_vm1, %v2868_v44 }
 0x152   : > { %2813 = vmatpush3.bf16.msra.mxu0 %v2810_v31 }
 0x158   : > { %2873 = vmatpush3.bf16.xpose.msk.msra.mxu1 %vm3605_vm1, %v2868_v44  ;;  %v930_v44 = vld [vmem:[%s3703_s2 + $0x60] sm:$0xff] }
 0x159   : > { %2876 = vmatprep.subr.msk.bf16.mxu1 %vm3605_vm1, %v2874_v6  ;;  %v2830_v46 = vpack.c.bf16 %v931_v45, %v930_v44 }
 0x160   : > { %2879 = vmatpush3.bf16.xpose.msk.msra.mxu1 %vm3605_vm1, %v2874_v6  ;;  %v1093_v6 = vld [vmem:[%s3742_s28 + $0x38] sm:$0xff] }
 0x161   : > { %2882 = vmatprep.subr.msk.bf16.mxu1 %vm3605_vm1, %v2880_v17 }
 0x168   : > { %2885 = vmatpush3.bf16.xpose.msk.msra.mxu1 %vm3605_vm1, %v2880_v17 }
 0x16f   : > { %2631 = vmatmul.mubr.msk.f32.vlgmr.msra.gmra.mrb[16].mxu1 %vm1102_vm0, %v845_v28  ;;  %v1098_v28 = vld [vmem:[%s3742_s28 + $0x60] sm:$0xff] }
 0x170   : > { %2633 = vmatprep.mubr.msk.f32.mxu1 %vm1102_vm0, %v850_v27  ;;  %v1099_v27 = vld [vmem:[%s3742_s28 + $0x68] sm:$0xff] }
 0x173   : > { %2634 = vmatmul.mubr.msk.f32.gmra.mrb[18].mxu1 %vm1102_vm0, %v855_v30 }
 0x174   : > { %2636 = vmatprep.mubr.msk.f32.mxu1 %vm1102_vm0, %v860_v29 }
 0x177   : > { %2637 = vmatmul.mubr.msk.f32.gmra.mrb[20].mxu1 %vm1102_vm0, %v865_v33  ;;  %v923_v33 = vld [vmem:[%s3703_s2 + $0x28] sm:$0xff] }
 0x178   : > { %2639 = vmatprep.mubr.msk.f32.mxu1 %vm1102_vm0, %v870_v43  ;;  %v2814_v35 = vpack.c.bf16 %v923_v33, %v922_v32 }
 0x17a   : > { %2815 = vmatprep.subr.bf16.mxu0 %v2814_v35 }
 0x17b   : > { %2640 = vmatmul.mubr.msk.f32.gmra.mrb[22].mxu1 %vm1102_vm0, %v875_v41  ;;  %2817 = vmatpush3.bf16.msra.mxu0 %v2814_v35  ;;  %v928_v41 = vld [vmem:[%s3703_s2 + $0x50] sm:$0xff]  ;;  %s2168_s2 = sshll.u32 %s520_s30, 7 }
 0x17c   : > { %2642 = vmatprep.mubr.msk.f32.mxu1 %vm1102_vm0, %v880_v4  ;;  %2819 = vmatprep.subr.bf16.mxu0 %v2818_v37  ;;  %v2826_v43 = vpack.c.bf16 %v929_v42, %v928_v41  ;;  %s3753_s14 = scalar_lea.vmem [#allocation4], %s2168_s2  ;;  %v3851_v42 = vld [vmem:[%s560_s26] ss:$0 sm:$0xff] }
 0x17f   : > { %2643 = vmatmul.mubr.msk.f32.gmra.mrb[24].mxu1 %vm1102_vm0, %v885_v2  ;;  %2821 = vmatpush3.bf16.msra.mxu0 %v2818_v37 }
 0x180   : > { %2645 = vmatprep.mubr.msk.f32.mxu1 %vm1102_vm0, %v890_v15  ;;  %2823 = vmatprep.subr.bf16.mxu0 %v2822_v40 }
 0x183   : > { %2646 = vmatmul.mubr.msk.f32.gmra.mrb[26].mxu1 %vm1102_vm0, %v895_v12  ;;  %2825 = vmatpush3.bf16.msra.mxu0 %v2822_v40  ;;  %v1095_v12 = vld [vmem:[%s3742_s28 + $0x48] sm:$0xff] }
 0x184   : > { %2648 = vmatprep.mubr.msk.f32.mxu1 %vm1102_vm0, %v900_v21  ;;  %2827 = vmatprep.subr.bf16.mxu0 %v2826_v43  ;;  %v1096_v21 = vld [vmem:[%s3742_s28 + $0x50] sm:$0xff] }
 0x187   : > { %2649 = vmatmul.mubr.msk.f32.gmra.mrb[28].mxu1 %vm1102_vm0, %v905_v19  ;;  %2829 = vmatpush3.bf16.msra.mxu0 %v2826_v43 }
 0x188   : > { %2651 = vmatprep.mubr.msk.f32.mxu1 %vm1102_vm0, %v910_v25  ;;  %2831 = vmatprep.subr.bf16.mxu0 %v2830_v46 }
 0x18b   : > { %2652 = vmatmul.mubr.msk.f32.gmra.mrb[30].mxu1 %vm1102_vm0, %v915_v0  ;;  %2833 = vmatpush3.bf16.msra.mxu0 %v2830_v46 }
 0x18c   : > { %2835 = vmatprep.subr.bf16.mxu0 %v2834_v1 }
 0x18f   : > { %2837 = vmatpush3.bf16.msra.mxu0 %v2834_v1 }
 0x192   : > { %2575 = vmatmul.mubr.f32.vlgmr.msra.gmra.mrb[16].mxu0 %v3520_v48  ;;  %v1087_v48 = vld [vmem:[%s3742_s28 + $0x8] sm:$0xff] }
 0x193   : > { %2577 = vmatprep.mubr.f32.mxu0 %v3523_v49  ;;  %v1086_v49 = vld [vmem:[%s3742_s28] sm:$0xff] }
 0x196   : > { %2578 = vmatmul.mubr.f32.gmra.mrb[18].mxu0 %v3528_v51 }
 0x197   : > { %2580 = vmatprep.mubr.f32.mxu0 %v3531_v52 }
 0x19a   : > { %2581 = vmatmul.mubr.f32.gmra.mrb[20].mxu0 %v3536_v53 }
 0x19b   : > { %2583 = vmatprep.mubr.f32.mxu0 %v3539_v54 }
 0x19e   : > { %2584 = vmatmul.mubr.f32.gmra.mrb[22].mxu0 %v3544_v55  ;;  %v1089_v55 = vld [vmem:[%s3742_s28 + $0x18] sm:$0xff] }
 0x19f   : > { %2586 = vmatprep.mubr.f32.mxu0 %v3548_v56  ;;  %v1088_v56 = vld [vmem:[%s3742_s28 + $0x10] sm:$0xff] }
 0x1a2   : > { %2587 = vmatmul.mubr.f32.gmra.mrb[24].mxu0 %v3554_v57 }
 0x1a3   : > { %2589 = vmatprep.mubr.f32.mxu0 %v3558_v58 }
 0x1a6   : > { %2590 = vmatmul.mubr.f32.gmra.mrb[26].mxu0 %v3564_v59 }
 0x1a7   : > { %2592 = vmatprep.mubr.f32.mxu0 %v3568_v60 }
 0x1aa   : > { %2593 = vmatmul.mubr.f32.gmra.mrb[28].mxu0 %v3574_v61  ;;  %v1091_v61 = vld [vmem:[%s3742_s28 + $0x28] sm:$0xff] }
 0x1ab   : > { %2595 = vmatprep.mubr.f32.mxu0 %v3578_v62  ;;  %v1090_v62 = vld [vmem:[%s3742_s28 + $0x20] sm:$0xff] }
 0x1ae   : > { %2596 = vmatmul.mubr.f32.gmra.mrb[30].mxu0 %v3584_v63 }
 0x242   : > { %v2632_v51 = vpop.f32.mrb[16].mxu1 }
 0x243   : > { %v3748_v52 = vadd.f32 %v2632_v51, %v1087_v48  ;;  %v1265_v53 = vpop.f32.mrb[17].mxu1 }
 0x244   : > { %v3750_v54 = vadd.f32 %v1265_v53, %v1086_v49 }
 0x245   : > { %1345 = vst [vmem:[%s3753_s14 + $0x8] sm:$0xff] %v3748_v52  ;;  %1362 = vmax.xlane.f32.xlu1 %v3748_v52 }
 0x246   : > { %1344 = vst [vmem:[%s3753_s14] sm:$0xff] %v3750_v54  ;;  %v2635_v57 = vpop.f32.mrb[18].mxu1  ;;  %1360 = vmax.xlane.f32.xlu0 %v3750_v54 }
 0x247   : > { %v3762_v58 = vadd.f32 %v2635_v57, %v1089_v55  ;;  %v1275_v59 = vpop.f32.mrb[19].mxu1 }
 0x248   : > { %v3764_v60 = vadd.f32 %v1275_v59, %v1088_v56 }
 0x249   : > { %1347 = vst [vmem:[%s3753_s14 + $0x18] sm:$0xff] %v3762_v58 }
 0x24a   : > { %1346 = vst [vmem:[%s3753_s14 + $0x10] sm:$0xff] %v3764_v60  ;;  %v2638_v63 = vpop.f32.mrb[20].mxu1  ;;  %1366 = vmax.xlane.f32.xlu0 %v3762_v58 }
 0x24b   : > { %v3773_v2 = vadd.f32 %v2638_v63, %v1091_v61  ;;  %v1285_v3 = vpop.f32.mrb[21].mxu1 }
 0x24c   : > { %v3775_v4 = vadd.f32 %v1285_v3, %v1090_v62 }
 0x24d   : > { %1349 = vst [vmem:[%s3753_s14 + $0x28] sm:$0xff] %v3773_v2 }
 0x24e   : > { %1348 = vst [vmem:[%s3753_s14 + $0x20] sm:$0xff] %v3775_v4  ;;  %v2641_v8 = vpop.f32.mrb[22].mxu1  ;;  %1364 = vmax.xlane.f32.xlu0 %v3764_v60 }
 0x24f   : > { %v3784_v9 = vadd.f32 %v2641_v8, %v1093_v6  ;;  %v1295_v10 = vpop.f32.mrb[23].mxu1 }
 0x250   : > { %v3786_v11 = vadd.f32 %v1295_v10, %v1092_v7 }
 0x251   : > { %1351 = vst [vmem:[%s3753_s14 + $0x38] sm:$0xff] %v3784_v9 }
 0x252   : > { %1350 = vst [vmem:[%s3753_s14 + $0x30] sm:$0xff] %v3786_v11  ;;  %v2644_v15 = vpop.f32.mrb[24].mxu1 }
 0x253   : > { %v3794_v17 = vadd.f32 %v2644_v15, %v1095_v12  ;;  %v1305_v18 = vpop.f32.mrb[25].mxu1 }
 0x254   : > { %v3796_v19 = vadd.f32 %v1305_v18, %v1094_v14 }
 0x255   : > { %1353 = vst [vmem:[%s3753_s14 + $0x48] sm:$0xff] %v3794_v17  ;;  %1378 = vmax.xlane.f32.xlu1 %v3794_v17 }
 0x256   : > { %1352 = vst [vmem:[%s3753_s14 + $0x40] sm:$0xff] %v3796_v19  ;;  %v2647_v22 = vpop.f32.mrb[26].mxu1  ;;  %1376 = vmax.xlane.f32.xlu0 %v3796_v19 }
 0x257   : > { %v3806_v0 = vadd.f32 %v2647_v22, %v1097_v20  ;;  %v1315_v23 = vpop.f32.mrb[27].mxu1 }
 0x258   : > { %v3808_v25 = vadd.f32 %v1315_v23, %v1096_v21 }
 0x259   : > { %1355 = vst [vmem:[%s3753_s14 + $0x58] sm:$0xff] %v3806_v0  ;;  %1382 = vmax.xlane.f32.xlu1 %v3806_v0 }
 0x25a   : > { %1354 = vst [vmem:[%s3753_s14 + $0x50] sm:$0xff] %v3808_v25  ;;  %1368 = vmax.xlane.f32.xlu0 %v3775_v4  ;;  %v2650_v29 = vpop.f32.mrb[28].mxu1 }
 0x25b   : > { %v3818_v30 = vadd.f32 %v2650_v29, %v1099_v27  ;;  %v1325_v5 = vpop.f32.mrb[29].mxu1 }
 0x25c   : > { %v3820_v13 = vadd.f32 %v1325_v5, %v1098_v28 }
 0x25d   : > { %1380 = vmax.xlane.f32.xlu1 %v3808_v25  ;;  %1357 = vst [vmem:[%s3753_s14 + $0x68] sm:$0xff] %v3818_v30 }
 0x25e   : > { %1370 = vmax.xlane.f32.xlu0 %v3773_v2  ;;  %1356 = vst [vmem:[%s3753_s14 + $0x60] sm:$0xff] %v3820_v13  ;;  %v2653_v26 = vpop.f32.mrb[30].mxu1 }
 0x25f   : > { %v3830_v31 = vadd.f32 %v2653_v26, %v1101_v16  ;;  %v1335_v32 = vpop.f32.mrb[31].mxu1 }
 0x260   : > { %v3832_v33 = vadd.f32 %v1335_v32, %v1100_v24 }
 0x261   : > { %1386 = vmax.xlane.f32.xlu1 %v3818_v30  ;;  %1359 = vst [vmem:[%s3753_s14 + $0x78] sm:$0xff] %v3830_v31 }
 0x262   : > { %1372 = vmax.xlane.f32.xlu0 %v3786_v11  ;;  %1358 = vst [vmem:[%s3753_s14 + $0x70] sm:$0xff] %v3832_v33 }
 0x265   : > { %1384 = vmax.xlane.f32.xlu1 %v3820_v13  ;;  %v2576_v46 = vpop.f32.mrb[16].mxu0 }
 0x266   : > { %1374 = vmax.xlane.f32.xlu0 %v3784_v9  ;;  %v1013_v47 = vadd.f32 %v2576_v46, %v3851_v42  ;;  %v1007_v50 = vpop.f32.mrb[17].mxu0 }
 0x267   : > { %v1008_v1 = vadd.f32 %v3851_v42, %v1007_v50 }
 0x269   : > { %1388 = vmax.xlane.f32.xlu1 %v3832_v33  ;;  %v2886_v49 = vpack.c.bf16 %v1013_v47, %v1008_v1  ;;  %v2579_v51 = vpop.f32.mrb[18].mxu0 }
 0x26a   : > { %v1023_v53 = vadd.f32 %v2579_v51, %v3851_v42 }
 0x26b   : > { %2887 = vmatprep.subr.bf16.mxu0 %v2886_v49  ;;  %2926 = vmatprep.subr.bf16.mxu1 %v2886_v49 }
 0x26c   : > { %2889 = vmatpush3.bf16.msra.mxu0 %v2886_v49  ;;  %2934 = vmatpush3.bf16.msra.mxu1 %v2886_v49 }
 0x26d   : > { %1390 = vmax.xlane.f32.xlu1 %v3830_v31 }
 0x2d2   : > { %v1363_v34 = vpop.xlane.xlu1 %1362 }
 0x2d3   : > { %v1393_v35 = vsub.f32 %v3748_v52, %v1363_v34  ;;  %v1361_v36 = vpop.xlane.xlu0 %1360 }
 0x2d4   : > { %v1392_v37 = vsub.f32 %v3750_v54, %v1361_v36  ;;  %v1017_v54 = vpop.f32.mrb[19].mxu0 }
 0x2d5   : > { %v1410_v38 = vmul.f32 1.442695, %v1393_v35  ;;  %v1018_v56 = vadd.f32 %v3851_v42, %v1017_v54  ;;  %v2582_v61 = vpop.f32.mrb[20].mxu0 }
 0x2d6   : > { %v1408_v39 = vmul.f32 1.442695, %v1392_v37  ;;  %v1033_v3 = vadd.f32 %v2582_v61, %v3851_v42  ;;  %v1027_v6 = vpop.f32.mrb[21].mxu0 }
 0x2d7   : > { %3044 = vpow2.f32 %v1410_v38  ;;  %v1367_v40 = vpop.xlane.xlu0 %1366  ;;  %v1028_v8 = vadd.f32 %v3851_v42, %v1027_v6 }
 0x2d8   : > { %v1395_v41 = vsub.f32 %v3762_v58, %v1367_v40  ;;  %3046 = vpow2.f32 %v1408_v39 }
 0x2d9   : > { %v2894_v15 = vpack.c.bf16 %v1033_v3, %v1028_v8 }
 0x2da   : > { %v1414_v43 = vmul.f32 1.442695, %v1395_v41 }
 0x2db   : > { %v1365_v44 = vpop.xlane.xlu0 %1364 }
 0x2dc   : > { %v1394_v45 = vsub.f32 %v3764_v60, %v1365_v44  ;;  %3048 = vpow2.f32 %v1414_v43  ;;  %v2890_v60 = vpack.c.bf16 %v1023_v53, %v1018_v56 }
 0x2de   : > { %v1412_v48 = vmul.f32 1.442695, %v1394_v45  ;;  %2891 = vmatprep.subr.bf16.mxu0 %v2890_v60  ;;  %2927 = vmatprep.subr.bf16.mxu1 %v2890_v60 }
 0x2df   : > { %2893 = vmatpush3.bf16.msra.mxu0 %v2890_v60  ;;  %2935 = vmatpush3.bf16.msra.mxu1 %v2890_v60 }
 0x2e0   : > { %3050 = vpow2.f32 %v1412_v48  ;;  %2895 = vmatprep.subr.bf16.mxu0 %v2894_v15  ;;  %2928 = vmatprep.subr.bf16.mxu1 %v2894_v15 }
 0x2e1   : > { %v3856_v52 = vpop.eup %3044 }
 0x2e2   : > { %v1379_v55 = vpop.xlane.xlu1 %1378  ;;  %1442 = vadd.xlane.f32.xlu0 %v3856_v52  ;;  %v3863_v62 = vpop.eup %3046 }
 0x2e3   : > { %v1401_v57 = vsub.f32 %v3794_v17, %v1379_v55  ;;  %v1377_v58 = vpop.xlane.xlu0 %1376  ;;  %v2585_v17 = vpop.f32.mrb[22].mxu0  ;;  %2897 = vmatpush3.bf16.msra.mxu0 %v2894_v15  ;;  %2936 = vmatpush3.bf16.msra.mxu1 %v2894_v15 }
 0x2e4   : > { %v1400_v59 = vsub.f32 %v3796_v19, %v1377_v58  ;;  %v1043_v19 = vadd.f32 %v2585_v17, %v3851_v42  ;;  %v1037_v20 = vpop.f32.mrb[23].mxu0 }
 0x2e5   : > { %v1426_v63 = vmul.f32 1.442695, %v1401_v57  ;;  %v1038_v22 = vadd.f32 %v3851_v42, %v1037_v20  ;;  %v2588_v16 = vpop.f32.mrb[24].mxu0 }
 0x2e6   : > { %v1383_v7 = vpop.xlane.xlu1 %1382  ;;  %1440 = vadd.xlane.f32.xlu0 %v3863_v62  ;;  %v1424_v10 = vmul.f32 1.442695, %v1400_v59  ;;  %v3869_v18 = vpop.eup %3048  ;;  %v1053_v26 = vadd.f32 %v2588_v16, %v3851_v42 }
 0x2e7   : > { %3052 = vpow2.f32 %v1426_v63  ;;  %v1403_v12 = vsub.f32 %v3806_v0, %v1383_v7  ;;  %v1369_v14 = vpop.xlane.xlu0 %1368  ;;  %v2898_v5 = vpack.c.bf16 %v1043_v19, %v1038_v22  ;;  %v1047_v32 = vpop.f32.mrb[25].mxu0 }
 0x2e8   : > { %3054 = vpow2.f32 %v1424_v10  ;;  %v1396_v28 = vsub.f32 %v3775_v4, %v1369_v14  ;;  %v2591_v40 = vpop.f32.mrb[26].mxu0 }
 0x2e9   : > { %v1430_v23 = vmul.f32 1.442695, %v1403_v12  ;;  %2899 = vmatprep.subr.bf16.mxu0 %v2898_v5  ;;  %2929 = vmatprep.subr.bf16.mxu1 %v2898_v5  ;;  %v1057_v43 = vpop.f32.mrb[27].mxu0  ;;  %v1063_v45 = vadd.f32 %v2591_v40, %v3851_v42 }
 0x2ea   : > { %v1381_v21 = vpop.xlane.xlu1 %1380  ;;  %1446 = vadd.xlane.f32.xlu0 %v3869_v18  ;;  %v3877_v24 = vpop.eup %3050  ;;  %2901 = vmatpush3.bf16.msra.mxu0 %v2898_v5  ;;  %v1416_v37 = vmul.f32 1.442695, %v1396_v28 }
 0x2eb   : > { %v1402_v0 = vsub.f32 %v3808_v25, %v1381_v21  ;;  %v1371_v27 = vpop.xlane.xlu0 %1370  ;;  %v1048_v25 = vadd.f32 %v3851_v42, %v1047_v32  ;;  %3056 = vpow2.f32 %v1430_v23  ;;  %2937 = vmatpush3.bf16.msra.mxu1 %v2898_v5  ;;  %v2594_v49 = vpop.f32.mrb[28].mxu0 }
 0x2ec   : > { %v1397_v29 = vsub.f32 %v3773_v2, %v1371_v27  ;;  %v1067_v53 = vpop.f32.mrb[29].mxu0  ;;  %v1073_v55 = vadd.f32 %v2594_v49, %v3851_v42 }
 0x2ed   : > { %v1428_v36 = vmul.f32 1.442695, %v1402_v0  ;;  %v2902_v39 = vpack.c.bf16 %v1053_v26, %v1048_v25  ;;  %v2597_v59 = vpop.f32.mrb[30].mxu0 }
 0x2ee   : > { %v1418_v34 = vmul.f32 1.442695, %v1397_v29  ;;  %v1387_v35 = vpop.xlane.xlu1 %1386  ;;  %1444 = vadd.xlane.f32.xlu0 %v3877_v24  ;;  %v1077_v61 = vpop.f32.mrb[31].mxu0  ;;  %v1083_v6 = vadd.f32 %v2597_v59, %v3851_v42 }
 0x2ef   : > { %v1405_v4 = vsub.f32 %v3818_v30, %v1387_v35  ;;  %v1373_v2 = vpop.xlane.xlu0 %1372  ;;  %v1058_v30 = vadd.f32 %v3851_v42, %v1057_v43  ;;  %2903 = vmatprep.subr.bf16.mxu0 %v2902_v39  ;;  %2930 = vmatprep.subr.bf16.mxu1 %v2902_v39  ;;  %v1078_v7 = vadd.f32 %v3851_v42, %v1077_v61 }
 0x2f0   : > { %3058 = vpow2.f32 %v1418_v34  ;;  %v1398_v38 = vsub.f32 %v3786_v11, %v1373_v2  ;;  %2905 = vmatpush3.bf16.msra.mxu0 %v2902_v39  ;;  %2938 = vmatpush3.bf16.msra.mxu1 %v2902_v39 }
 0x2f1   : > { %v3884_v41 = vpop.eup %3052  ;;  %3060 = vpow2.f32 %v1428_v36  ;;  %v1434_v46 = vmul.f32 1.442695, %v1405_v4  ;;  %v2906_v48 = vpack.c.bf16 %v1063_v45, %v1058_v30  ;;  %v2914_v10 = vpack.c.bf16 %v1083_v6, %v1078_v7 }
 0x2f2   : > { %1458 = vadd.xlane.f32.xlu1 %v3884_v41  ;;  %v1385_v44 = vpop.xlane.xlu1 %1384  ;;  %3062 = vpow2.f32 %v1416_v37  ;;  %v1420_v11 = vmul.f32 1.442695, %v1398_v38  ;;  %v3891_v51 = vpop.eup %3054 }
 0x2f3   : > { %v1404_v47 = vsub.f32 %v3820_v13, %v1385_v44  ;;  %v1375_v50 = vpop.xlane.xlu0 %1374  ;;  %v1068_v13 = vadd.f32 %v3851_v42, %v1067_v53  ;;  %2907 = vmatprep.subr.bf16.mxu0 %v2906_v48  ;;  %3064 = vpow2.f32 %v1434_v46  ;;  %2931 = vmatprep.subr.bf16.mxu1 %v2906_v48 }
 0x2f4   : > { %v1399_v1 = vsub.f32 %v3784_v9, %v1375_v50  ;;  %2909 = vmatpush3.bf16.msra.mxu0 %v2906_v48  ;;  %3066 = vpow2.f32 %v1420_v11  ;;  %2939 = vmatpush3.bf16.msra.mxu1 %v2906_v48 }
 0x2f5   : > { %v1432_v56 = vmul.f32 1.442695, %v1404_v47  ;;  %v2910_v58 = vpack.c.bf16 %v1073_v55, %v1068_v13  ;;  %v3897_v60 = vpop.eup %3056 }
 0x2f6   : > { %v1389_v54 = vpop.xlane.xlu1 %1388  ;;  %1456 = vadd.xlane.f32.xlu1 %v3891_v51  ;;  %v1422_v9 = vmul.f32 1.442695, %v1399_v1 }
 0x2f7   : > { %v1406_v57 = vsub.f32 %v3832_v33, %v1389_v54  ;;  %2911 = vmatprep.subr.bf16.mxu0 %v2910_v58  ;;  %3068 = vpow2.f32 %v1432_v56  ;;  %2932 = vmatprep.subr.bf16.mxu1 %v2910_v58 }
 0x2f8   : > { %2913 = vmatpush3.bf16.msra.mxu0 %v2910_v58  ;;  %3070 = vpow2.f32 %v1422_v9  ;;  %2940 = vmatpush3.bf16.msra.mxu1 %v2910_v58 }
 0x2f9   : > { %v1436_v33 = vmul.f32 1.442695, %v1406_v57  ;;  %2915 = vmatprep.subr.bf16.mxu0 %v2914_v10  ;;  %2933 = vmatprep.subr.bf16.mxu1 %v2914_v10 }
 0x2fa   : > { %v3899_v63 = vpop.eup %3058  ;;  %v1391_v3 = vpop.xlane.xlu1 %1390  ;;  %1462 = vadd.xlane.f32.xlu1 %v3897_v60 }
 0x2fb   : > { %v1407_v8 = vsub.f32 %v3830_v31, %v1391_v3  ;;  %1450 = vadd.xlane.f32.xlu0 %v3899_v63  ;;  %v3906_v12 = vpop.eup %3060  ;;  %3072 = vpow2.f32 %v1436_v33 }
 0x2fc   : > { %v3908_v14 = vpop.eup %3062  ;;  %2917 = vmatpush3.bf16.msra.mxu0 %v2914_v10  ;;  %2941 = vmatpush3.bf16.msra.mxu1 %v2914_v10 }
 0x2fd   : > { %v1438_v42 = vmul.f32 1.442695, %v1407_v8  ;;  %v3912_v31 = vpop.eup %3064 }
 0x2fe   : > { %1460 = vadd.xlane.f32.xlu1 %v3906_v12  ;;  %v3914_v15 = vpop.eup %3066 }
 0x2ff   : > { %1448 = vadd.xlane.f32.xlu0 %v3908_v14  ;;  %3074 = vpow2.f32 %v1438_v42 }
 0x301   : > { %v3918_v17 = vpop.eup %3068 }
 0x302   : > { %1466 = vadd.xlane.f32.xlu1 %v3912_v31  ;;  %v3920_v19 = vpop.eup %3070 }
 0x303   : > { %1452 = vadd.xlane.f32.xlu0 %v3914_v15 }
 0x305   : > { %v3924_v20 = vpop.eup %3072 }
 0x306   : > { %1464 = vadd.xlane.f32.xlu1 %v3918_v17 }
 0x307   : > { %1454 = vadd.xlane.f32.xlu0 %v3920_v19 }
 0x309   : > { %v3927_v21 = vpop.eup %3074 }
 0x30a   : > { %1468 = vadd.xlane.f32.xlu1 %v3924_v20 }
 0x30e   : > { %1470 = vadd.xlane.f32.xlu1 %v3927_v21 }
 0x36f   : > { %v1443_v22 = vpop.xlane.xlu0 %1442 }
 0x370   : > { %3076 = vrcp.f32 %v1443_v22 }
 0x373   : > { %v1441_v23 = vpop.xlane.xlu0 %1440 }
 0x374   : > { %3078 = vrcp.f32 %v1441_v23 }
 0x377   : > { %v1447_v0 = vpop.xlane.xlu0 %1446 }
 0x378   : > { %3080 = vrcp.f32 %v1447_v0 }
 0x37a   : > { %v3077_v28 = vpop.eup %3076 }
 0x37b   : > { %v1445_v27 = vpop.xlane.xlu0 %1444  ;;  %v1489_v26 = vmul.f32 %v3077_v28, %v3856_v52 }
 0x37c   : > { %3082 = vrcp.f32 %v1445_v27 }
 0x37e   : > { %v3079_v29 = vpop.eup %3078 }
 0x37f   : > { %v1459_v5 = vpop.xlane.xlu1 %1458  ;;  %v1488_v16 = vmul.f32 %v3079_v29, %v3863_v62 }
 0x380   : > { %3084 = vrcp.f32 %v1459_v5 }
 0x381   : > { %2686 = vmatprep.mubr.f32.mxu0 %v1488_v16 }
 0x382   : > { %2687 = vmatmul.mubr.f32.vlgmr.msra.gmra.mrb[32].mxu0 %v1489_v26  ;;  %v3081_v34 = vpop.eup %3080 }
 0x383   : > { %v1457_v32 = vpop.xlane.xlu1 %1456  ;;  %v1491_v2 = vmul.f32 %v3081_v34, %v3869_v18 }
 0x384   : > { %3086 = vrcp.f32 %v1457_v32 }
 0x386   : > { %v3083_v35 = vpop.eup %3082 }
 0x387   : > { %v1463_v25 = vpop.xlane.xlu1 %1462  ;;  %v1490_v36 = vmul.f32 %v3083_v35, %v3877_v24 }
 0x388   : > { %v1451_v4 = vpop.xlane.xlu0 %1450  ;;  %3088 = vrcp.f32 %v1463_v25 }
 0x389   : > { %2689 = vmatprep.mubr.f32.mxu0 %v1490_v36  ;;  %3090 = vrcp.f32 %v1451_v4 }
 0x38a   : > { %2690 = vmatmul.mubr.f32.gmra.mrb[34].mxu0 %v1491_v2  ;;  %v3085_v37 = vpop.eup %3084 }
 0x38b   : > { %v1461_v62 = vpop.xlane.xlu1 %1460  ;;  %v1497_v43 = vmul.f32 %v3085_v37, %v3884_v41 }
 0x38c   : > { %3092 = vrcp.f32 %v1461_v62  ;;  %v1449_v52 = vpop.xlane.xlu0 %1448 }
 0x38d   : > { %3094 = vrcp.f32 %v1449_v52 }
 0x38e   : > { %v3087_v38 = vpop.eup %3086 }
 0x38f   : > { %v1467_v39 = vpop.xlane.xlu1 %1466  ;;  %v1496_v40 = vmul.f32 %v3087_v38, %v3891_v51 }
 0x390   : > { %v1453_v44 = vpop.xlane.xlu0 %1452 }
 0x391   : > { %3096 = vrcp.f32 %v1453_v44  ;;  %2698 = vmatprep.mubr.f32.mxu1 %v1496_v40 }
 0x392   : > { %2699 = vmatmul.mubr.f32.vlgmr.msra.gmra.mrb[32].mxu1 %v1497_v43  ;;  %3098 = vrcp.f32 %v1467_v39  ;;  %v3089_v24 = vpop.eup %3088 }
 0x393   : > { %v1465_v18 = vpop.xlane.xlu1 %1464  ;;  %v3091_v30 = vpop.eup %3090  ;;  %v1499_v41 = vmul.f32 %v3089_v24, %v3897_v60 }
 0x394   : > { %3100 = vrcp.f32 %v1465_v18  ;;  %v1455_v45 = vpop.xlane.xlu0 %1454  ;;  %v1493_v48 = vmul.f32 %v3091_v30, %v3899_v63 }
 0x395   : > { %3102 = vrcp.f32 %v1455_v45 }
 0x396   : > { %v3093_v46 = vpop.eup %3092 }
 0x397   : > { %v3095_v47 = vpop.eup %3094  ;;  %v1469_v50 = vpop.xlane.xlu1 %1468  ;;  %v1498_v11 = vmul.f32 %v3093_v46, %v3906_v12 }
 0x398   : > { %3104 = vrcp.f32 %v1469_v50  ;;  %v1492_v1 = vmul.f32 %v3095_v47, %v3908_v14 }
 0x399   : > { %2701 = vmatprep.mubr.f32.mxu1 %v1498_v11 }
 0x39a   : > { %2692 = vmatprep.mubr.f32.mxu0 %v1492_v1  ;;  %2702 = vmatmul.mubr.f32.gmra.mrb[34].mxu1 %v1499_v41 }
 0x39b   : > { %v3097_v49 = vpop.eup %3096  ;;  %v1471_v51 = vpop.xlane.xlu1 %1470  ;;  %2693 = vmatmul.mubr.f32.gmra.mrb[36].mxu0 %v1493_v48 }
 0x39c   : > { %3106 = vrcp.f32 %v1471_v51  ;;  %v1494_v53 = vmul.f32 %v3097_v49, %v3914_v15  ;;  %v3099_v54 = vpop.eup %3098 }
 0x39d   : > { %v1501_v9 = vmul.f32 %v3099_v54, %v3912_v31 }
 0x39e   : > { %v3101_v55 = vpop.eup %3100  ;;  %2695 = vmatprep.mubr.f32.mxu0 %v1494_v53 }
 0x39f   : > { %v3103_v13 = vpop.eup %3102  ;;  %v1500_v56 = vmul.f32 %v3101_v55, %v3918_v17 }
 0x3a0   : > { %v1495_v57 = vmul.f32 %v3103_v13, %v3920_v19 }
 0x3a1   : > { %2704 = vmatprep.mubr.f32.mxu1 %v1500_v56 }
 0x3a2   : > { %v3105_v58 = vpop.eup %3104  ;;  %2696 = vmatmul.mubr.f32.gmra.mrb[38].mxu0 %v1495_v57  ;;  %2705 = vmatmul.mubr.f32.gmra.mrb[36].mxu1 %v1501_v9 }
 0x3a3   : > { %v1502_v59 = vmul.f32 %v3105_v58, %v3924_v20 }
 0x3a5   : > { %2707 = vmatprep.mubr.f32.mxu1 %v1502_v59 }
 0x3a6   : > { %v3107_v60 = vpop.eup %3106 }
 0x3a7   : > { %v1503_v61 = vmul.f32 %v3107_v60, %v3927_v21  ;;  %v2218_v21 = vld [vmem:[%s4186_s29] ss:$0 sm:$0xff] (!%p2217_p6) }
 0x3a8   : > { %1660 = vst [vmem:[%s3947_s13] sm:$0xff] (!%p2217_p6), %v2218_v21  ;;  %1661 = vst [vmem:[%s3947_s13 + $0x8] sm:$0xff] (!%p2217_p6), %v2218_v21 }
 0x3a9   : > { %2708 = vmatmul.mubr.f32.gmra.mrb[38].mxu1 %v1503_v61  ;;  %1662 = vst [vmem:[%s3947_s13 + $0x10] sm:$0xff] (!%p2217_p6), %v2218_v21  ;;  %1663 = vst [vmem:[%s3947_s13 + $0x18] sm:$0xff] (!%p2217_p6), %v2218_v21 }
 0x3aa   : > { %1664 = vst [vmem:[%s3947_s13 + $0x20] sm:$0xff] (!%p2217_p6), %v2218_v21  ;;  %1665 = vst [vmem:[%s3947_s13 + $0x28] sm:$0xff] (!%p2217_p6), %v2218_v21 }
 0x3ab   : > { %1666 = vst [vmem:[%s3947_s13 + $0x30] sm:$0xff] (!%p2217_p6), %v2218_v21  ;;  %1667 = vst [vmem:[%s3947_s13 + $0x38] sm:$0xff] (!%p2217_p6), %v2218_v21 }
 0x3ac   : > { %1668 = vst [vmem:[%s3947_s13 + $0x40] sm:$0xff] (!%p2217_p6), %v2218_v21  ;;  %1669 = vst [vmem:[%s3947_s13 + $0x48] sm:$0xff] (!%p2217_p6), %v2218_v21 }
 0x3ad   : > { %1670 = vst [vmem:[%s3947_s13 + $0x50] sm:$0xff] (!%p2217_p6), %v2218_v21  ;;  %1671 = vst [vmem:[%s3947_s13 + $0x58] sm:$0xff] (!%p2217_p6), %v2218_v21 }
 0x3ae   : > { %1672 = vst [vmem:[%s3947_s13 + $0x60] sm:$0xff] (!%p2217_p6), %v2218_v21  ;;  %1673 = vst [vmem:[%s3947_s13 + $0x68] sm:$0xff] (!%p2217_p6), %v2218_v21 }
 0x3af   : > { %1674 = vst [vmem:[%s3947_s13 + $0x70] sm:$0xff] (!%p2217_p6), %v2218_v21  ;;  %1675 = vst [vmem:[%s3947_s13 + $0x78] sm:$0xff] (!%p2217_p6), %v2218_v21 }
 0x455   : > { %v2688_v63 = vpop.f32.mrb[32].mxu0 }
 0x456   : > { %v1570_v3 = vpop.f32.mrb[33].mxu0 }
 0x45d   : > { %v2691_v6 = vpop.f32.mrb[34].mxu0 }
 0x45e   : > { %v1580_v7 = vpop.f32.mrb[35].mxu0 }
 0x465   : > { %v2700_v33 = vpop.f32.mrb[32].mxu1 }
 0x466   : > { %v1610_v8 = vpop.f32.mrb[33].mxu1 }
 0x46d   : > { %v2703_v10 = vpop.f32.mrb[34].mxu1 }
 0x46e   : > { %v2694_v12 = vpop.f32.mrb[36].mxu0  ;;  %v1620_v14 = vpop.f32.mrb[35].mxu1 }
 0x46f   : > { %v1590_v42 = vpop.f32.mrb[37].mxu0 }
 0x475   : > { %v2697_v31 = vpop.f32.mrb[38].mxu0  ;;  %v2706_v15 = vpop.f32.mrb[36].mxu1 }
 0x476   : > { %v1600_v17 = vpop.f32.mrb[39].mxu0  ;;  %v1630_v19 = vpop.f32.mrb[37].mxu1 }
 0x477   : > { %1652 = sbr.rel (%p2217_p6) target bundleno = 1150 (0x47e), region = 64 }
 0x47c   : > { %v2709_v20 = vpop.f32.mrb[38].mxu1 }
 0x47d   : > { %v1640_v22 = vpop.f32.mrb[39].mxu1 }
 0x47e PF: > { %v1692_v23 = vld [vmem:[%s3468_s22] sm:$0xff]  ;;  %v1693_v0 = vld [vmem:[%s3468_s22 + $0x8] sm:$0xff]  ;;  %v1694_v27 = vld [vmem:[%s3468_s22 + $0x10] sm:$0xff]  ;;  %2718 = vmatprep.mubr.msk.f32.mxu0 %vm1102_vm0, %v1570_v3  ;;  %s2240_s10 = sshll.u32 %s3246_s24, 6  ;;  %s1958_s16 = sshll.u32 %s3753_s14, 4  ;;  %s3997_s16 = int_to_ptr.vmem [resolvable:$true] %s1958_s16 }
 0x47f   : > { %v2918_v28 = vpack.c.bf16 %v1693_v0, %v1692_v23  ;;  %v1695_v29 = vld [vmem:[%s3468_s22 + $0x18] sm:$0xff]  ;;  %s2239_s22 = sshll.u32 %s3242_s23, 4  ;;  %s4187_s12 = sld [smem:[#allocation21_spill]] }
 0x480   : > { %v2922_v5 = vpack.c.bf16 %v1695_v29, %v1694_v27  ;;  %s1955_s28 = sadd.s32 %s2240_s10, %s2239_s22  ;;  %s4001_s29 = scalar_lea.sflag [#allocation5], %s520_s30 }
 0x481   : > { %2919 = vmatprep.subr.bf16.mxu0 %v2918_v28  ;;  %s2241_s2 = sshll.u32 %s1955_s28, 7  ;;  %s3108_s0 = scalar_lea.vmem %s3997_s16, 2048 }
 0x482   : > { %2921 = vmatpush3.bf16.msra.mxu0 %v2918_v28  ;;  %p3109_p8 = scmp.ne.s32.totalorder %s3997_s16, %s3108_s0  ;;  %s3260_s23 = smov [#allocation4]  }
 0x483   : > { %2923 = vmatprep.subr.bf16.mxu0 %v2922_v5  ;;  %s3112_s14 = sshll.u32 %s3260_s23, 4  ;;  %s3113_s14 = int_to_ptr.vmem [resolvable:$false] %s3112_s14 }
 0x484   : > { %p3110_p9 = pnand %p3109_p8, %p3424_p12  ;;  %s3114_s22 = scalar_lea.vmem %s3113_s14, 4096 }
 0x485   : > { %s3995_s20 = scalar_lea.hbm %s4187_s12, %s2241_s2  ;;  %p3115_p11 = scmp.lt.s32.totalorder %s3997_s16, %s3113_s14 }
 0x486   : > { %2925 = vmatpush3.bf16.msra.mxu0 %v2922_v5  ;;  %p3111_p10 = pneg %p3110_p9  ;;  %p3116_p0 = scmp.lt.s32.totalorder %s3114_s22, %s3108_s0 }
 0x488   : > { %p3117_p1 = por %p3116_p0, %p3115_p11 }
 0x489   : > { %2719 = vmatmul.mubr.msk.f32.vlgmr.msra.gmra.mrb[40].mxu0 %vm1102_vm0, %v2688_v63 }
 0x48a   : > { %2721 = vmatprep.mubr.msk.f32.mxu0 %vm1102_vm0, %v1580_v7  ;;  %p3118_p4 = pnand %p3117_p1, %p3111_p10 }
 0x48d   : > { %2722 = vmatmul.mubr.msk.f32.gmra.mrb[42].mxu0 %vm1102_vm0, %v2691_v6 }
 0x48e   : > { %2724 = vmatprep.mubr.msk.f32.mxu0 %vm1102_vm0, %v1590_v42 }
 0x491   : > { %2725 = vmatmul.mubr.msk.f32.gmra.mrb[44].mxu0 %vm1102_vm0, %v2694_v12 }
 0x492   : > { %2727 = vmatprep.mubr.msk.f32.mxu0 %vm1102_vm0, %v1600_v17 }
 0x495   : > { %2728 = vmatmul.mubr.msk.f32.gmra.mrb[46].mxu0 %vm1102_vm0, %v2697_v31 }
 0x496   : > { %2730 = vmatprep.mubr.msk.f32.mxu0 %vm1102_vm0, %v1610_v8 }
 0x499   : > { %2731 = vmatmul.mubr.msk.f32.gmra.mrb[48].mxu0 %vm1102_vm0, %v2700_v33 }
 0x49a   : > { %2733 = vmatprep.mubr.msk.f32.mxu0 %vm1102_vm0, %v1620_v14 }
 0x49d   : > { %2734 = vmatmul.mubr.msk.f32.gmra.mrb[50].mxu0 %vm1102_vm0, %v2703_v10 }
 0x49e   : > { %2736 = vmatprep.mubr.msk.f32.mxu0 %vm1102_vm0, %v1630_v19 }
 0x4a1   : > { %2737 = vmatmul.mubr.msk.f32.gmra.mrb[52].mxu0 %vm1102_vm0, %v2706_v15 }
 0x4a2   : > { %2739 = vmatprep.mubr.msk.f32.mxu0 %vm1102_vm0, %v1640_v22 }
 0x4a5   : > { %2740 = vmatmul.mubr.msk.f32.gmra.mrb[54].mxu0 %vm1102_vm0, %v2709_v20 }
 0x4a6   : > { %3121 = shalt.err (!%p3118_p4)
}
 0x4a7   : > { %s3122_s30 = scalar_lea.hbm %s3995_s20, 2048  ;;  %s3126_s2 = scalar_lea.hbm %s4187_s12, 16384 }
 0x4a8   : > { %p3123_p2 = scmp.ne.s32.totalorder %s3995_s20, %s3122_s30  ;;  %p3127_p8 = scmp.lt.u32.totalorder %s3995_s20, %s4187_s12 }
 0x4a9   : > { %p3128_p9 = scmp.lt.u32.totalorder %s3126_s2, %s3122_s30  ;;  %p3130_p11 = scmp.lt.u32.totalorder %s3122_s30, %s3995_s20 }
 0x4aa   : > { %p3124_p5 = pnand %p3123_p2, %p3424_p12 }
 0x4ab   : > { %p3129_p10 = por %p3128_p9, %p3127_p8 }
 0x4ac   : > { %p3125_p6 = pneg %p3124_p5 }
 0x4ad   : > { %p3131_p0 = por %p3130_p11, %p3129_p10 }
 0x4af   : > { %p3132_p1 = pnand %p3131_p0, %p3125_p6 }
 0x4b1   : > { %3135 = shalt.err (!%p3132_p1)
}
 0x4b2   : > { %s3261_s0 = smov 128   ;;  %s3262_s23 = smov 8   ;;  %v1677_v16 = vld [vmem:[%s3947_s13 + $0x8] sm:$0xff]  ;;  %v1676_v26 = vld [vmem:[%s3947_s13] sm:$0xff]  ;;  %v1679_v36 = vld [vmem:[%s3947_s13 + $0x18] sm:$0xff] }
 0x4b3   : > { %2943 = dma.vmem_to_hbm [thread:$0]  (%p3424_p12), %s3997_s16, 2048, %s3995_s20, %s4001_s29, %s3261_s0, %s3261_s0, %s3262_s23  }
 0x4b4   : > { %v1678_v4 = vld [vmem:[%s3947_s13 + $0x10] sm:$0xff]  ;;  %v1681_v38 = vld [vmem:[%s3947_s13 + $0x28] sm:$0xff]  ;;  %v1680_v39 = vld [vmem:[%s3947_s13 + $0x20] sm:$0xff]  ;;  %s2249_s16 = sshll.u32 %s3246_s24, 11  ;;  %s1940_s20 = sshll.u32 %s3947_s13, 4  ;;  %s4065_s20 = int_to_ptr.vmem [resolvable:$true] %s1940_s20 }
 0x4b5   : > { %v1683_v24 = vld [vmem:[%s3947_s13 + $0x38] sm:$0xff]  ;;  %v1682_v45 = vld [vmem:[%s3947_s13 + $0x30] sm:$0xff]  ;;  %v1685_v11 = vld [vmem:[%s3947_s13 + $0x48] sm:$0xff]  ;;  %s4189_s22 = sld [smem:[#allocation20_spill]]  ;;  %s4191_s28 = sand.u32 1, %s3234_s21  }
 0x4b6   : > { %v1684_v1 = vld [vmem:[%s3947_s13 + $0x40] sm:$0xff]  ;;  %v1687_v53 = vld [vmem:[%s3947_s13 + $0x58] sm:$0xff]  ;;  %v1686_v54 = vld [vmem:[%s3947_s13 + $0x50] sm:$0xff]  ;;  %s4071_s24 = scalar_lea.sflag [#allocation3], %s4191_s28  ;;  %s3136_s2 = scalar_lea.vmem %s4065_s20, 2048 }
 0x4b7   : > { %v1689_v9 = vld [vmem:[%s3947_s13 + $0x68] sm:$0xff]  ;;  %v1688_v58 = vld [vmem:[%s3947_s13 + $0x60] sm:$0xff]  ;;  %v1691_v3 = vld [vmem:[%s3947_s13 + $0x78] sm:$0xff]  ;;  %p3137_p12 = scmp.ne.s32.totalorder %s4065_s20, %s3136_s2  ;;  %s3263_s8 = smov [#allocation2]  }
 0x4b8   : > { %v1690_v6 = vld [vmem:[%s3947_s13 + $0x70] sm:$0xff]  ;;  %s3140_s26 = sshll.u32 %s3263_s8, 4  ;;  %s3141_s26 = int_to_ptr.vmem [resolvable:$false] %s3140_s26 }
 0x4b9   : > { %p3138_p4 = pnand %p3137_p12, %p3395_p3  ;;  %p3143_p5 = scmp.lt.s32.totalorder %s4065_s20, %s3141_s26 }
 0x4bb   : > { %s4190_s30 = smov %s4189_s22  ;;  %s4063_s10 = scalar_lea.hbm %s4189_s22, %s2249_s16 }
 0x4bc   : > { %p3139_p2 = pneg %p3138_p4  ;;  %s3142_s16 = scalar_lea.vmem %s3141_s26, 4096 }
 0x4bd   : > { %p3144_p6 = scmp.lt.s32.totalorder %s3142_s16, %s3136_s2 }
 0x4bf   : > { %p3145_p8 = por %p3144_p6, %p3143_p5 }
 0x4c1   : > { %p3146_p9 = pnand %p3145_p8, %p3139_p2 }
 0x55c   : > { %v2720_v32 = vpop.f32.mrb[40].mxu0 }
 0x55d   : > { %v1890_v34 = vadd.f32 %v2720_v32, %v1677_v16  ;;  %v1810_v35 = vpop.f32.mrb[41].mxu0 }
 0x55e   : > { %v1889_v25 = vadd.f32 %v1810_v35, %v1676_v26 }
 0x55f   : > { %1906 = vst [vmem:[%s3947_s13 + $0x8] sm:$0xff] %v1890_v34 }
 0x560   : > { %1905 = vst [vmem:[%s3947_s13] sm:$0xff] %v1889_v25  ;;  %v2723_v2 = vpop.f32.mrb[42].mxu0 }
 0x561   : > { %v1892_v62 = vadd.f32 %v2723_v2, %v1679_v36  ;;  %v1820_v52 = vpop.f32.mrb[43].mxu0 }
 0x562   : > { %v1891_v37 = vadd.f32 %v1820_v52, %v1678_v4 }
 0x563   : > { %1908 = vst [vmem:[%s3947_s13 + $0x18] sm:$0xff] %v1892_v62 }
 0x564   : > { %1907 = vst [vmem:[%s3947_s13 + $0x10] sm:$0xff] %v1891_v37  ;;  %v2726_v40 = vpop.f32.mrb[44].mxu0 }
 0x565   : > { %v1894_v43 = vadd.f32 %v2726_v40, %v1681_v38  ;;  %v1830_v44 = vpop.f32.mrb[45].mxu0 }
 0x566   : > { %v1893_v18 = vadd.f32 %v1830_v44, %v1680_v39 }
 0x567   : > { %1910 = vst [vmem:[%s3947_s13 + $0x28] sm:$0xff] %v1894_v43 }
 0x568   : > { %1909 = vst [vmem:[%s3947_s13 + $0x20] sm:$0xff] %v1893_v18  ;;  %v2729_v30 = vpop.f32.mrb[46].mxu0 }
 0x569   : > { %v1896_v46 = vadd.f32 %v2729_v30, %v1683_v24  ;;  %v1840_v47 = vpop.f32.mrb[47].mxu0 }
 0x56a   : > { %v1895_v50 = vadd.f32 %v1840_v47, %v1682_v45 }
 0x56b   : > { %1912 = vst [vmem:[%s3947_s13 + $0x38] sm:$0xff] %v1896_v46 }
 0x56c   : > { %1911 = vst [vmem:[%s3947_s13 + $0x30] sm:$0xff] %v1895_v50  ;;  %v2732_v41 = vpop.f32.mrb[48].mxu0 }
 0x56d   : > { %v1898_v48 = vadd.f32 %v2732_v41, %v1685_v11  ;;  %v1850_v49 = vpop.f32.mrb[49].mxu0 }
 0x56e   : > { %v1897_v51 = vadd.f32 %v1850_v49, %v1684_v1 }
 0x56f   : > { %1914 = vst [vmem:[%s3947_s13 + $0x48] sm:$0xff] %v1898_v48 }
 0x570   : > { %1913 = vst [vmem:[%s3947_s13 + $0x40] sm:$0xff] %v1897_v51  ;;  %v2735_v55 = vpop.f32.mrb[50].mxu0 }
 0x571   : > { %v1900_v13 = vadd.f32 %v2735_v55, %v1687_v53  ;;  %v1860_v56 = vpop.f32.mrb[51].mxu0 }
 0x572   : > { %v1899_v57 = vadd.f32 %v1860_v56, %v1686_v54 }
 0x573   : > { %1916 = vst [vmem:[%s3947_s13 + $0x58] sm:$0xff] %v1900_v13 }
 0x574   : > { %1915 = vst [vmem:[%s3947_s13 + $0x50] sm:$0xff] %v1899_v57  ;;  %v2738_v59 = vpop.f32.mrb[52].mxu0 }
 0x575   : > { %v1902_v60 = vadd.f32 %v2738_v59, %v1689_v9  ;;  %v1870_v61 = vpop.f32.mrb[53].mxu0 }
 0x576   : > { %v1901_v63 = vadd.f32 %v1870_v61, %v1688_v58 }
 0x577   : > { %1918 = vst [vmem:[%s3947_s13 + $0x68] sm:$0xff] %v1902_v60 }
 0x578   : > { %1917 = vst [vmem:[%s3947_s13 + $0x60] sm:$0xff] %v1901_v63  ;;  %v2741_v7 = vpop.f32.mrb[54].mxu0 }
 0x579   : > { %v1904_v33 = vadd.f32 %v2741_v7, %v1691_v3  ;;  %v1880_v8 = vpop.f32.mrb[55].mxu0 }
 0x57a   : > { %v1903_v10 = vadd.f32 %v1880_v8, %v1690_v6 }
 0x57b   : > { %1920 = vst [vmem:[%s3947_s13 + $0x78] sm:$0xff] %v1904_v33 }
 0x57c   : > { %1919 = vst [vmem:[%s3947_s13 + $0x70] sm:$0xff] %v1903_v10 }
 0x57d   : > { %3149 = shalt.err (!%p3146_p9)
}
 0x57e   : > { %s3150_s13 = scalar_lea.hbm %s4063_s10, 2048  ;;  %s3154_s22 = scalar_lea.hbm %s4190_s30, 4096 }
 0x57f   : > { %p3151_p10 = scmp.ne.s32.totalorder %s4063_s10, %s3150_s13  ;;  %p3155_p1 = scmp.lt.u32.totalorder %s4063_s10, %s4190_s30 }
 0x580   : > { %p3156_p12 = scmp.lt.u32.totalorder %s3154_s22, %s3150_s13  ;;  %p3158_p2 = scmp.lt.u32.totalorder %s3150_s13, %s4063_s10 }
 0x581   : > { %p3152_p11 = pnand %p3151_p10, %p3395_p3 }
 0x582   : > { %p3157_p4 = por %p3156_p12, %p3155_p1 }
 0x583   : > { %p3153_p0 = pneg %p3152_p11 }
 0x584   : > { %p3159_p5 = por %p3158_p2, %p3157_p4 }
 0x586   : > { %p3160_p6 = pnand %p3159_p5, %p3153_p0 }
 0x588   : > { %3163 = shalt.err (!%p3160_p6)
}
 0x589   : > { %2942 = dma.vmem_to_hbm [thread:$0]  (%p3395_p3), %s4065_s20, 2048, %s4063_s10, %s4071_s24, %s3261_s0, %s3261_s0, %s3262_s23  }
 0x58a PF: > { %s4192_s2 = sld [smem:[#allocation8_spill]]  ;;  %p2953_p8 = scmp.ge.s32.totalorder %s3258_s27, 2 }
 0x58c   : > { %p2947_p9 = pnand %p2953_p8, %p3412_p7 }
 0x590   : > { %s1973_s26 = sand.u32 1, %s4192_s2  }
 0x591   : > { %s1974_s16 = scalar_lea.sflag [#allocation3], %s1973_s26 }
 0x592   : > { %3209 = dma.done.wait (!%p2947_p9), %s1974_s16, 2048  }
 0x593   : > { %3211 = vsyncadd (!%p2947_p9), %s1974_s16, 4294965248  ;;  %s1982_s15 = sand.u32 1, %s3218_s17   ;;  %p2950_p10 = pnand %p2953_p8, %p3436_p13 }
 0x594   : > { %s1983_s13 = scalar_lea.sflag [#allocation5], %s1982_s15 }
 0x595   : > { %3213 = dma.done.wait (!%p2950_p10), %s1983_s13, 2048  }
 0x596   : > { %3215 = vsyncadd (!%p2950_p10), %s1983_s13, 4294965248  ;;  %s28_s27 = sadd.s32 1, %s3258_s27   ;;  %s4193_s11 = sld [smem:[#allocation9_spill]] }
 0x597   : > { %p25_p3 = scmp.ge.s32.totalorder %s28_s27, 10   ;;  %s4194_s22 = sld [smem:[#allocation15_spill]] }
 0x598   : > { %s4195_s23 = sld [smem:[#allocation10_spill]]  ;;  %s4196_s24 = sld [smem:[#allocation11_spill]] }
 0x599   : > { %s4197_s0 = sld [smem:[#allocation12_spill]]  ;;  %s4198_s26 = sld [smem:[#allocation14_spill]] }
 0x59a   : > { %s4199_s17 = smov %s3222_s18  ;;  %s4200_s18 = smov %s3226_s19 }
 0x59b   : > { %s4201_s19 = smov %s3432_s25  ;;  %s4202_s20 = smov %s3234_s21 }
 0x59c   : > { %s4203_s21 = smov %s4193_s11  ;;  %27 = sbr.rel (!%p25_p3) target bundleno = 16 (0x10), region = 140 }
 0x59f   : > { %s4204_s25 = smov %s4197_s0 }
 0x5a3   :  { %1988 = vsyncpa [#allocation3], 1 }
 0x5a4   :  { %1990 = vsyncpa [#allocation3 + $0x1], 1 }
 0x5a5   :  { %1991 = vsyncpa [#allocation5], 1 }
 0x5a6   :  { %1993 = vsyncpa [#allocation5 + $0x1], 1 }

</bundles_post_ra>
